<compile_context>
chip_gen: v7x
topology: tpu7x:2x2x1
jax: 0.10.0
libtpu: 0.0.40
codegen_flags: <defaults>
</compile_context>

<pallas_src>
import jax
import jax.numpy as jnp
from jax.experimental import pallas as pl
from jax.experimental.pallas import tpu as pltpu

EPS = 1e-5


def _round_up(x, m):
    return (x + m - 1) // m * m


# ----------------------------------------------------------------------------
# Kernel
# ----------------------------------------------------------------------------
def ffn_kernel(
    x_ref,
    w1_ref, b1_ref,
    w2_ref, b2_ref,
    w3_ref, b3_ref,
    w4_ref, b4_ref,
    w5_ref, b5_ref,
    o_ref,
):
    """Fused 5-layer MLP: 4 x (matmul + bias + ReLU) + final matmul + bias.

    BatchNorm (eval mode) is pre-folded into weights/biases by the wrapper and
    Dropout is identity at inference, so the body is pure MXU work.
    """
    compute_dtype = w1_ref.dtype
    h = x_ref[...]

    def linear_relu(h, w_ref, b_ref):
        y = jnp.dot(h, w_ref[...], preferred_element_type=jnp.float32)
        y = y + b_ref[...]
        return jnp.maximum(y, 0.0).astype(compute_dtype)

    h = linear_relu(h, w1_ref, b1_ref)   # fc1 + bn1 + relu1 (+dropout1 = id)
    h = linear_relu(h, w2_ref, b2_ref)   # fc2 + bn2 + relu2 (+dropout2 = id)
    h = linear_relu(h, w3_ref, b3_ref)   # fc3 + bn3 + relu3 (+dropout3 = id)
    h = linear_relu(h, w4_ref, b4_ref)   # fc4 + bn4 + relu4 (+dropout4 = id)

    # fc5 (no bn / relu / dropout); output is f32 and lane-padded to 128.
    o_ref[...] = (
        jnp.dot(h, w5_ref[...], preferred_element_type=jnp.float32) + b5_ref[...]
    )
    # TODO(synk): training-mode Dropout (stochastic masks) and batch-statistic
    # BatchNorm are not implemented; this kernel reproduces eval-mode forward.


# ----------------------------------------------------------------------------
# Wrapper-level parameter preprocessing
# ----------------------------------------------------------------------------
def fold_batchnorm(raw_params):
    """Fold eval-mode BatchNorm1d into the preceding Linear.

    raw_params layout: [w1, b1, g1, be1, m1, v1, ..., w4, b4, g4, be4, m4, v4,
                        w5, b5], with w already (in, out) and vectors (1, out).
    Returns [w1', b1', ..., w5, b5] (10 arrays, f32).
    """
    folded = []
    idx = 0
    for layer in range(5):
        w, b = raw_params[idx], raw_params[idx + 1]
        idx += 2
        if layer < 4:
            g, be, m, v = raw_params[idx:idx + 4]
            idx += 4
            scale = g * jax.lax.rsqrt(v + EPS)   # (1, out)
            w = w * scale                        # scale each output column
            b = (b - m) * scale + be
        folded += [w, b]
    return folded


def _vmem_capacity_bytes():
    try:
        info = pltpu.get_tpu_info()
        cap = getattr(info, "vmem_capacity_bytes", None)
        if cap:
            return int(cap)
    except Exception:
        pass
    return 64 << 20  # conservative (v7x-sized) default if query unavailable


_HAS_BUFFERED = hasattr(pl, "Buffered")


def _resident_spec(shape):
    """BlockSpec for a grid-invariant (VMEM-resident) array: single buffer."""
    idx = lambda i: (0, 0)
    if _HAS_BUFFERED:
        try:
            return pl.BlockSpec(shape, idx, pipeline_mode=pl.Buffered(1))
        except TypeError:
            pass
    return pl.BlockSpec(shape, idx)


def custom_ffn_v4(x, raw_params, *, tile_m=512, compute_dtype=jnp.bfloat16):
    """x: (B, input_dim) float32. raw_params: flat list (see init_params)."""
    B, input_dim = x.shape
    params = fold_batchnorm(raw_params)
    output_dim = params[-1].shape[-1]

    # ---- pad every K/N dim to a multiple of 128 so all matmuls are lane-dense
    dims = [input_dim] + [params[2 * i].shape[1] for i in range(5)]
    pdims = [_round_up(d, 128) for d in dims]

    ws, bs = [], []
    for i in range(5):
        w = jnp.pad(params[2 * i],
                    ((0, pdims[i] - dims[i]), (0, pdims[i + 1] - dims[i + 1])))
        b = jnp.pad(params[2 * i + 1],
                    ((0, 0), (0, pdims[i + 1] - dims[i + 1])))
        ws.append(w.astype(compute_dtype))     # bf16 weights -> MXU
        bs.append(b.astype(jnp.float32))       # f32 bias epilogue
    # TODO(synk): int8 (v5e/v6e) / fp8 (v7x) weight quantization with
    # per-output-channel scales folded into the f32 bias epilogue (2x MXU rate).

    in_pad, out_pad = pdims[0], pdims[-1]
    x_c = jnp.pad(x.astype(compute_dtype), ((0, 0), (0, in_pad - input_dim)))

    # ---- batch tiling --------------------------------------------------------
    if B >= 128:
        tm = min(_round_up(tile_m, 128), _round_up(B, 128))
        # ensure >=2 grid steps so the 2nd TensorCore (v7x megacore) gets work
        if B >= 256 and _round_up(B, tm) // tm < 2:
            tm = max(128, _round_up(pl.cdiv(B, 2), 128))
    else:
        tm = _round_up(B, 16)                  # bf16 packs 16 rows per vreg

    # ---- generation-aware VMEM budget: resident params (x1 w/ Buffered(1)),
    #      double-buffered x/o tiles, per-layer activation scratch, slack ------
    cap = max(_vmem_capacity_bytes() - (16 << 20), 32 << 20)
    param_bytes = sum(int(a.size) * a.dtype.itemsize for a in ws + bs)
    max_width = max(pdims[1:])

    def vmem_need(tm_):
        io = 2 * (tm_ * in_pad * 2 + tm_ * out_pad * 4)          # 2-deep x/o
        act = 2 * tm_ * max_width * 4 + tm_ * max_width * 2       # f32 y + bf16 h
        return param_bytes + io + act + (4 << 20)

    while B >= 128 and tm > 128 and vmem_need(tm) > cap:
        tm = max(128, tm // 2)
    # TODO(synk): if param_bytes alone exceeds `cap` (hidden_dim >~ 2k on the
    # 64 MiB v7x part), stream w4/w5 over the 8*hidden dim with
    # memory_space=pl.ANY + pltpu.emit_pipeline instead of keeping them resident.

    b_pad = _round_up(B, tm)
    if b_pad != B:
        x_c = jnp.pad(x_c, ((0, b_pad - B), (0, 0)))
    grid = (b_pad // tm,)

    vmem_limit = int(min(cap, max(16 << 20, vmem_need(tm))))
    vmem_limit_fallback = int(min(cap, max(16 << 20, vmem_need(tm) + param_bytes)))

    # ---- specs: x/o tiled over the grid, weights/biases single-buffer resident
    kernel_args = []
    param_specs = []
    for w, b in zip(ws, bs):
        kernel_args += [w, b]
        param_specs += [_resident_spec(w.shape), _resident_spec(b.shape)]
    x_spec = pl.BlockSpec((tm, in_pad), lambda i: (i, 0))
    out_specs = pl.BlockSpec((tm, out_pad), lambda i: (i, 0))

    flops = 2 * B * sum(dims[i] * dims[i + 1] for i in range(5))
    bytes_accessed = (int(x.size) * 4 + B * output_dim * 4
                      + sum(int(p.size) * 4 for p in params))
    cost = pl.CostEstimate(flops=flops, transcendentals=0,
                           bytes_accessed=bytes_accessed)

    def _call(in_specs, limit):
        return pl.pallas_call(
            ffn_kernel,
            out_shape=jax.ShapeDtypeStruct((b_pad, out_pad), jnp.float32),
            grid=grid,
            in_specs=in_specs,
            out_specs=out_specs,
            compiler_params=pltpu.CompilerParams(
                dimension_semantics=("parallel",),
                vmem_limit_bytes=limit,
            ),
            cost_estimate=cost,
        )(x_c, *kernel_args)

    try:
        out = _call([x_spec] + param_specs, vmem_limit)
    except Exception:
        # Fallback for jax versions that reject pipeline_mode / Buffered(1).
        plain = [pl.BlockSpec(a.shape, lambda i: (0, 0)) for a in kernel_args]
        out = _call([x_spec] + plain, vmem_limit_fallback)

    return out[:B, :output_dim]


# ----------------------------------------------------------------------------
# Synthetic parameters (mirror CustomFFNv4.__init__ shapes) and references
# ----------------------------------------------------------------------------
def init_params(key, input_dim, hidden_dim, output_dim):
    dims = [
        (input_dim, hidden_dim),
        (hidden_dim, 2 * hidden_dim),
        (2 * hidden_dim, 4 * hidden_dim),
        (4 * hidden_dim, 8 * hidden_dim),
        (8 * hidden_dim, output_dim),
    ]
    params = []
    for i, (din, dout) in enumerate(dims):
        key, kw, kb, kg, kbe, km, kv = jax.random.split(key, 7)
        bound = 1.0 / jnp.sqrt(jnp.float32(din))
        w = jax.random.uniform(kw, (din, dout), jnp.float32, -bound, bound)
        b = jax.random.uniform(kb, (1, dout), jnp.float32, -bound, bound)
        params += [w, b]
        if i < 4:  # layers 1..4 have BatchNorm1d
            gamma = 1.0 + 0.1 * jax.random.normal(kg, (1, dout), jnp.float32)
            beta = 0.1 * jax.random.normal(kbe, (1, dout), jnp.float32)
            rmean = 0.1 * jax.random.normal(km, (1, dout), jnp.float32)
            rvar = jnp.abs(1.0 + 0.1 * jax.random.normal(kv, (1, dout), jnp.float32))
            params += [gamma, beta, rmean, rvar]
    return params


def reference_forward_f32(x, raw_params):
    """Pure-JAX f32 eval-mode forward (mirrors the PyTorch module)."""
    idx = 0
    h = x
    for layer in range(5):
        w, b = raw_params[idx], raw_params[idx + 1]
        idx += 2
        h = h @ w + b
        if layer < 4:
            g, be, m, v = raw_params[idx:idx + 4]
            idx += 4
            h = (h - m) * jax.lax.rsqrt(v + EPS) * g + be
            h = jnp.maximum(h, 0.0)
    return h


def reference_forward_lowp(x, raw_params, compute_dtype=jnp.bfloat16):
    """Pure-JAX reference using the same BN folding / bf16 casts as the kernel."""
    params = fold_batchnorm(raw_params)
    h = x.astype(compute_dtype)
    for layer in range(5):
        w = params[2 * layer].astype(compute_dtype)
        b = params[2 * layer + 1].astype(jnp.float32)
        h = jnp.dot(h, w, preferred_element_type=jnp.float32) + b
        if layer < 4:
            h = jnp.maximum(h, 0.0).astype(compute_dtype)
    return h


if __name__ == "__main__":
    key = jax.random.PRNGKey(0)
    kx, kp = jax.random.split(key)

    batch = 8
    input_dim = 32
    hidden_dim = 32
    output_dim = 16

    x = jax.random.normal(kx, (batch, input_dim), jnp.float32)
    raw_params = init_params(kp, input_dim, hidden_dim, output_dim)

    out = jax.block_until_ready(custom_ffn_v4(x, raw_params))
    assert out.shape == (batch, output_dim)

    # Tight check against a reference that does the same bf16 compute.
    ref_lp = reference_forward_lowp(x, raw_params)
    assert jnp.allclose(out, ref_lp, atol=2e-3, rtol=2e-3), (
        float(jnp.max(jnp.abs(out - ref_lp)))
    )
    # Looser check against the full-f32 module semantics (bf16 weight rounding).
    ref_f32 = reference_forward_f32(x, raw_params)
    assert jnp.allclose(out, ref_f32, atol=5e-2, rtol=5e-2), (
        float(jnp.max(jnp.abs(out - ref_f32)))
    )

    print("KERNEL_OK")
</pallas_src>

<mosaic_0001>
module attributes {stable_mosaic.version = 11 : i64} {
  func.func @ffn_kernel(%arg0: i32, %arg1: memref<16x128xbf16, #tpu.memory_space<vmem>>, %arg2: memref<128x128xbf16, #tpu.memory_space<vmem>>, %arg3: memref<1x128xf32, #tpu.memory_space<vmem>>, %arg4: memref<128x128xbf16, #tpu.memory_space<vmem>>, %arg5: memref<1x128xf32, #tpu.memory_space<vmem>>, %arg6: memref<128x128xbf16, #tpu.memory_space<vmem>>, %arg7: memref<1x128xf32, #tpu.memory_space<vmem>>, %arg8: memref<128x256xbf16, #tpu.memory_space<vmem>>, %arg9: memref<1x256xf32, #tpu.memory_space<vmem>>, %arg10: memref<256x128xbf16, #tpu.memory_space<vmem>>, %arg11: memref<1x128xf32, #tpu.memory_space<vmem>>, %arg12: memref<16x128xf32, #tpu.memory_space<vmem>>) attributes {dimension_semantics = [#tpu.dimension_semantics<parallel>], iteration_bounds = array<i64: 1>, scalar_prefetch = 0 : i64, scratch_operands = 0 : i64, tpu.core_type = #tpu.core_type<tc>, window_params = [{transform_indices = @transform_0, window_bounds = array<i64: 16, 128>}, {pipeline_mode = #tpu.pipeline_mode<synchronous>, transform_indices = @transform_1, window_bounds = array<i64: 128, 128>}, {pipeline_mode = #tpu.pipeline_mode<synchronous>, transform_indices = @transform_2, window_bounds = array<i64: 1, 128>}, {pipeline_mode = #tpu.pipeline_mode<synchronous>, transform_indices = @transform_3, window_bounds = array<i64: 128, 128>}, {pipeline_mode = #tpu.pipeline_mode<synchronous>, transform_indices = @transform_4, window_bounds = array<i64: 1, 128>}, {pipeline_mode = #tpu.pipeline_mode<synchronous>, transform_indices = @transform_5, window_bounds = array<i64: 128, 128>}, {pipeline_mode = #tpu.pipeline_mode<synchronous>, transform_indices = @transform_6, window_bounds = array<i64: 1, 128>}, {pipeline_mode = #tpu.pipeline_mode<synchronous>, transform_indices = @transform_7, window_bounds = array<i64: 128, 256>}, {pipeline_mode = #tpu.pipeline_mode<synchronous>, transform_indices = @transform_8, window_bounds = array<i64: 1, 256>}, {pipeline_mode = #tpu.pipeline_mode<synchronous>, transform_indices = @transform_9, window_bounds = array<i64: 256, 128>}, {pipeline_mode = #tpu.pipeline_mode<synchronous>, transform_indices = @transform_10, window_bounds = array<i64: 1, 128>}, {transform_indices = @transform_11, window_bounds = array<i64: 16, 128>}]} {
    %c0 = arith.constant 0 : index
    %c0_0 = arith.constant 0 : index
    %0 = vector.load %arg1[%c0, %c0_0] : memref<16x128xbf16, #tpu.memory_space<vmem>>, vector<16x128xbf16>
    %c0_1 = arith.constant 0 : index
    %c0_2 = arith.constant 0 : index
    %1 = vector.load %arg2[%c0_1, %c0_2] : memref<128x128xbf16, #tpu.memory_space<vmem>>, vector<128x128xbf16>
    %cst = arith.constant dense<0.000000e+00> : vector<16x128xf32>
    %2 = tpu.matmul %0, %1, %cst {dimension_numbers = #tpu.dot_dimension_numbers<[1], [0], [0], [1], [0, 0, 1, 1], [], []>} : vector<16x128xbf16>, vector<128x128xbf16>, vector<16x128xf32> -> vector<16x128xf32>
    %c0_3 = arith.constant 0 : index
    %c0_4 = arith.constant 0 : index
    %3 = vector.load %arg3[%c0_3, %c0_4] : memref<1x128xf32, #tpu.memory_space<vmem>>, vector<1x128xf32>
    %4 = vector.broadcast %3 : vector<1x128xf32> to vector<16x128xf32>
    %5 = arith.addf %2, %4 : vector<16x128xf32>
    %cst_5 = arith.constant 0.000000e+00 : f32
    %6 = vector.broadcast %cst_5 : f32 to vector<16x128xf32>
    %7 = arith.maximumf %5, %6 : vector<16x128xf32>
    %8 = arith.truncf %7 : vector<16x128xf32> to vector<16x128xbf16>
    %c0_6 = arith.constant 0 : index
    %c0_7 = arith.constant 0 : index
    %9 = vector.load %arg4[%c0_6, %c0_7] : memref<128x128xbf16, #tpu.memory_space<vmem>>, vector<128x128xbf16>
    %cst_8 = arith.constant dense<0.000000e+00> : vector<16x128xf32>
    %10 = tpu.matmul %8, %9, %cst_8 {dimension_numbers = #tpu.dot_dimension_numbers<[1], [0], [0], [1], [0, 0, 1, 1], [], []>} : vector<16x128xbf16>, vector<128x128xbf16>, vector<16x128xf32> -> vector<16x128xf32>
    %c0_9 = arith.constant 0 : index
    %c0_10 = arith.constant 0 : index
    %11 = vector.load %arg5[%c0_9, %c0_10] : memref<1x128xf32, #tpu.memory_space<vmem>>, vector<1x128xf32>
    %12 = vector.broadcast %11 : vector<1x128xf32> to vector<16x128xf32>
    %13 = arith.addf %10, %12 : vector<16x128xf32>
    %cst_11 = arith.constant 0.000000e+00 : f32
    %14 = vector.broadcast %cst_11 : f32 to vector<16x128xf32>
    %15 = arith.maximumf %13, %14 : vector<16x128xf32>
    %16 = arith.truncf %15 : vector<16x128xf32> to vector<16x128xbf16>
    %c0_12 = arith.constant 0 : index
    %c0_13 = arith.constant 0 : index
    %17 = vector.load %arg6[%c0_12, %c0_13] : memref<128x128xbf16, #tpu.memory_space<vmem>>, vector<128x128xbf16>
    %cst_14 = arith.constant dense<0.000000e+00> : vector<16x128xf32>
    %18 = tpu.matmul %16, %17, %cst_14 {dimension_numbers = #tpu.dot_dimension_numbers<[1], [0], [0], [1], [0, 0, 1, 1], [], []>} : vector<16x128xbf16>, vector<128x128xbf16>, vector<16x128xf32> -> vector<16x128xf32>
    %c0_15 = arith.constant 0 : index
    %c0_16 = arith.constant 0 : index
    %19 = vector.load %arg7[%c0_15, %c0_16] : memref<1x128xf32, #tpu.memory_space<vmem>>, vector<1x128xf32>
    %20 = vector.broadcast %19 : vector<1x128xf32> to vector<16x128xf32>
    %21 = arith.addf %18, %20 : vector<16x128xf32>
    %cst_17 = arith.constant 0.000000e+00 : f32
    %22 = vector.broadcast %cst_17 : f32 to vector<16x128xf32>
    %23 = arith.maximumf %21, %22 : vector<16x128xf32>
    %24 = arith.truncf %23 : vector<16x128xf32> to vector<16x128xbf16>
    %c0_18 = arith.constant 0 : index
    %c0_19 = arith.constant 0 : index
    %25 = vector.load %arg8[%c0_18, %c0_19] : memref<128x256xbf16, #tpu.memory_space<vmem>>, vector<128x256xbf16>
    %cst_20 = arith.constant dense<0.000000e+00> : vector<16x256xf32>
    %26 = tpu.matmul %24, %25, %cst_20 {dimension_numbers = #tpu.dot_dimension_numbers<[1], [0], [0], [1], [0, 0, 1, 1], [], []>} : vector<16x128xbf16>, vector<128x256xbf16>, vector<16x256xf32> -> vector<16x256xf32>
    %c0_21 = arith.constant 0 : index
    %c0_22 = arith.constant 0 : index
    %27 = vector.load %arg9[%c0_21, %c0_22] : memref<1x256xf32, #tpu.memory_space<vmem>>, vector<1x256xf32>
    %28 = vector.broadcast %27 : vector<1x256xf32> to vector<16x256xf32>
    %29 = arith.addf %26, %28 : vector<16x256xf32>
    %cst_23 = arith.constant 0.000000e+00 : f32
    %30 = vector.broadcast %cst_23 : f32 to vector<16x256xf32>
    %31 = arith.maximumf %29, %30 : vector<16x256xf32>
    %32 = arith.truncf %31 : vector<16x256xf32> to vector<16x256xbf16>
    %c0_24 = arith.constant 0 : index
    %c0_25 = arith.constant 0 : index
    %33 = vector.load %arg10[%c0_24, %c0_25] : memref<256x128xbf16, #tpu.memory_space<vmem>>, vector<256x128xbf16>
    %cst_26 = arith.constant dense<0.000000e+00> : vector<16x128xf32>
    %34 = tpu.matmul %32, %33, %cst_26 {dimension_numbers = #tpu.dot_dimension_numbers<[1], [0], [0], [1], [0, 0, 1, 1], [], []>} : vector<16x256xbf16>, vector<256x128xbf16>, vector<16x128xf32> -> vector<16x128xf32>
    %c0_27 = arith.constant 0 : index
    %c0_28 = arith.constant 0 : index
    %35 = vector.load %arg11[%c0_27, %c0_28] : memref<1x128xf32, #tpu.memory_space<vmem>>, vector<1x128xf32>
    %36 = vector.broadcast %35 : vector<1x128xf32> to vector<16x128xf32>
    %37 = arith.addf %34, %36 : vector<16x128xf32>
    %c0_29 = arith.constant 0 : index
    %c0_30 = arith.constant 0 : index
    %38 = vector.load %arg12[%c0_29, %c0_30] : memref<16x128xf32, #tpu.memory_space<vmem>>, vector<16x128xf32>
    tpu.vector_store %arg12[%c0_29, %c0_30], %37 {strides = array<i32>} : memref<16x128xf32, #tpu.memory_space<vmem>>, vector<16x128xf32>,
    return
  }
  func.func @transform_0(%arg0: i32) -> (i32, i32) {
    %c0_i32 = arith.constant 0 : i32
    %c0_i32_0 = arith.constant 0 : i32
    return %arg0, %c0_i32 : i32, i32
  }
  func.func @transform_1(%arg0: i32) -> (i32, i32) {
    %c0_i32 = arith.constant 0 : i32
    %c0_i32_0 = arith.constant 0 : i32
    %c0_i32_1 = arith.constant 0 : i32
    return %c0_i32, %c0_i32_0 : i32, i32
  }
  func.func @transform_2(%arg0: i32) -> (i32, i32) {
    %c0_i32 = arith.constant 0 : i32
    %c0_i32_0 = arith.constant 0 : i32
    %c0_i32_1 = arith.constant 0 : i32
    return %c0_i32, %c0_i32_0 : i32, i32
  }
  func.func @transform_3(%arg0: i32) -> (i32, i32) {
    %c0_i32 = arith.constant 0 : i32
    %c0_i32_0 = arith.constant 0 : i32
    %c0_i32_1 = arith.constant 0 : i32
    return %c0_i32, %c0_i32_0 : i32, i32
  }
  func.func @transform_4(%arg0: i32) -> (i32, i32) {
    %c0_i32 = arith.constant 0 : i32
    %c0_i32_0 = arith.constant 0 : i32
    %c0_i32_1 = arith.constant 0 : i32
    return %c0_i32, %c0_i32_0 : i32, i32
  }
  func.func @transform_5(%arg0: i32) -> (i32, i32) {
    %c0_i32 = arith.constant 0 : i32
    %c0_i32_0 = arith.constant 0 : i32
    %c0_i32_1 = arith.constant 0 : i32
    return %c0_i32, %c0_i32_0 : i32, i32
  }
  func.func @transform_6(%arg0: i32) -> (i32, i32) {
    %c0_i32 = arith.constant 0 : i32
    %c0_i32_0 = arith.constant 0 : i32
    %c0_i32_1 = arith.constant 0 : i32
    return %c0_i32, %c0_i32_0 : i32, i32
  }
  func.func @transform_7(%arg0: i32) -> (i32, i32) {
    %c0_i32 = arith.constant 0 : i32
    %c0_i32_0 = arith.constant 0 : i32
    %c0_i32_1 = arith.constant 0 : i32
    return %c0_i32, %c0_i32_0 : i32, i32
  }
  func.func @transform_8(%arg0: i32) -> (i32, i32) {
    %c0_i32 = arith.constant 0 : i32
    %c0_i32_0 = arith.constant 0 : i32
    %c0_i32_1 = arith.constant 0 : i32
    return %c0_i32, %c0_i32_0 : i32, i32
  }
  func.func @transform_9(%arg0: i32) -> (i32, i32) {
    %c0_i32 = arith.constant 0 : i32
    %c0_i32_0 = arith.constant 0 : i32
    %c0_i32_1 = arith.constant 0 : i32
    return %c0_i32, %c0_i32_0 : i32, i32
  }
  func.func @transform_10(%arg0: i32) -> (i32, i32) {
    %c0_i32 = arith.constant 0 : i32
    %c0_i32_0 = arith.constant 0 : i32
    %c0_i32_1 = arith.constant 0 : i32
    return %c0_i32, %c0_i32_0 : i32, i32
  }
  func.func @transform_11(%arg0: i32) -> (i32, i32) {
    %c0_i32 = arith.constant 0 : i32
    %c0_i32_0 = arith.constant 0 : i32
    return %arg0, %c0_i32 : i32, i32
  }
}

module attributes {stable_mosaic.version = 11 : i64} {
  func.func @ffn_kernel(%arg0: i32, %arg1: memref<16x128xbf16, #tpu.memory_space<vmem>>, %arg2: memref<128x128xbf16, #tpu.memory_space<vmem>>, %arg3: memref<1x128xf32, #tpu.memory_space<vmem>>, %arg4: memref<128x128xbf16, #tpu.memory_space<vmem>>, %arg5: memref<1x128xf32, #tpu.memory_space<vmem>>, %arg6: memref<128x128xbf16, #tpu.memory_space<vmem>>, %arg7: memref<1x128xf32, #tpu.memory_space<vmem>>, %arg8: memref<128x256xbf16, #tpu.memory_space<vmem>>, %arg9: memref<1x256xf32, #tpu.memory_space<vmem>>, %arg10: memref<256x128xbf16, #tpu.memory_space<vmem>>, %arg11: memref<1x128xf32, #tpu.memory_space<vmem>>, %arg12: memref<16x128xf32, #tpu.memory_space<vmem>>) attributes {dimension_semantics = [#tpu.dimension_semantics<parallel>], iteration_bounds = array<i64: 1>, scalar_prefetch = 0 : i64, scratch_operands = 0 : i64, tpu.core_type = #tpu.core_type<tc>, window_params = [{transform_indices = @transform_0, window_bounds = array<i64: 16, 128>}, {pipeline_mode = #tpu.pipeline_mode<synchronous>, transform_indices = @transform_1, window_bounds = array<i64: 128, 128>}, {pipeline_mode = #tpu.pipeline_mode<synchronous>, transform_indices = @transform_2, window_bounds = array<i64: 1, 128>}, {pipeline_mode = #tpu.pipeline_mode<synchronous>, transform_indices = @transform_3, window_bounds = array<i64: 128, 128>}, {pipeline_mode = #tpu.pipeline_mode<synchronous>, transform_indices = @transform_4, window_bounds = array<i64: 1, 128>}, {pipeline_mode = #tpu.pipeline_mode<synchronous>, transform_indices = @transform_5, window_bounds = array<i64: 128, 128>}, {pipeline_mode = #tpu.pipeline_mode<synchronous>, transform_indices = @transform_6, window_bounds = array<i64: 1, 128>}, {pipeline_mode = #tpu.pipeline_mode<synchronous>, transform_indices = @transform_7, window_bounds = array<i64: 128, 256>}, {pipeline_mode = #tpu.pipeline_mode<synchronous>, transform_indices = @transform_8, window_bounds = array<i64: 1, 256>}, {pipeline_mode = #tpu.pipeline_mode<synchronous>, transform_indices = @transform_9, window_bounds = array<i64: 256, 128>}, {pipeline_mode = #tpu.pipeline_mode<synchronous>, transform_indices = @transform_10, window_bounds = array<i64: 1, 128>}, {transform_indices = @transform_11, window_bounds = array<i64: 16, 128>}]} {
    %c0 = arith.constant 0 : index
    %c0_0 = arith.constant 0 : index
    %0 = vector.load %arg1[%c0, %c0_0] : memref<16x128xbf16, #tpu.memory_space<vmem>>, vector<16x128xbf16>
    %c0_1 = arith.constant 0 : index
    %c0_2 = arith.constant 0 : index
    %1 = vector.load %arg2[%c0_1, %c0_2] : memref<128x128xbf16, #tpu.memory_space<vmem>>, vector<128x128xbf16>
    %cst = arith.constant dense<0.000000e+00> : vector<16x128xf32>
    %2 = tpu.matmul %0, %1, %cst {dimension_numbers = #tpu.dot_dimension_numbers<[1], [0], [0], [1], [0, 0, 1, 1], [], []>} : vector<16x128xbf16>, vector<128x128xbf16>, vector<16x128xf32> -> vector<16x128xf32>
    %c0_3 = arith.constant 0 : index
    %c0_4 = arith.constant 0 : index
    %3 = vector.load %arg3[%c0_3, %c0_4] : memref<1x128xf32, #tpu.memory_space<vmem>>, vector<1x128xf32>
    %4 = vector.broadcast %3 : vector<1x128xf32> to vector<16x128xf32>
    %5 = arith.addf %2, %4 : vector<16x128xf32>
    %cst_5 = arith.constant 0.000000e+00 : f32
    %6 = vector.broadcast %cst_5 : f32 to vector<16x128xf32>
    %7 = arith.maximumf %5, %6 : vector<16x128xf32>
    %8 = arith.truncf %7 : vector<16x128xf32> to vector<16x128xbf16>
    %c0_6 = arith.constant 0 : index
    %c0_7 = arith.constant 0 : index
    %9 = vector.load %arg4[%c0_6, %c0_7] : memref<128x128xbf16, #tpu.memory_space<vmem>>, vector<128x128xbf16>
    %cst_8 = arith.constant dense<0.000000e+00> : vector<16x128xf32>
    %10 = tpu.matmul %8, %9, %cst_8 {dimension_numbers = #tpu.dot_dimension_numbers<[1], [0], [0], [1], [0, 0, 1, 1], [], []>} : vector<16x128xbf16>, vector<128x128xbf16>, vector<16x128xf32> -> vector<16x128xf32>
    %c0_9 = arith.constant 0 : index
    %c0_10 = arith.constant 0 : index
    %11 = vector.load %arg5[%c0_9, %c0_10] : memref<1x128xf32, #tpu.memory_space<vmem>>, vector<1x128xf32>
    %12 = vector.broadcast %11 : vector<1x128xf32> to vector<16x128xf32>
    %13 = arith.addf %10, %12 : vector<16x128xf32>
    %cst_11 = arith.constant 0.000000e+00 : f32
    %14 = vector.broadcast %cst_11 : f32 to vector<16x128xf32>
    %15 = arith.maximumf %13, %14 : vector<16x128xf32>
    %16 = arith.truncf %15 : vector<16x128xf32> to vector<16x128xbf16>
    %c0_12 = arith.constant 0 : index
    %c0_13 = arith.constant 0 : index
    %17 = vector.load %arg6[%c0_12, %c0_13] : memref<128x128xbf16, #tpu.memory_space<vmem>>, vector<128x128xbf16>
    %cst_14 = arith.constant dense<0.000000e+00> : vector<16x128xf32>
    %18 = tpu.matmul %16, %17, %cst_14 {dimension_numbers = #tpu.dot_dimension_numbers<[1], [0], [0], [1], [0, 0, 1, 1], [], []>} : vector<16x128xbf16>, vector<128x128xbf16>, vector<16x128xf32> -> vector<16x128xf32>
    %c0_15 = arith.constant 0 : index
    %c0_16 = arith.constant 0 : index
    %19 = vector.load %arg7[%c0_15, %c0_16] : memref<1x128xf32, #tpu.memory_space<vmem>>, vector<1x128xf32>
    %20 = vector.broadcast %19 : vector<1x128xf32> to vector<16x128xf32>
    %21 = arith.addf %18, %20 : vector<16x128xf32>
    %cst_17 = arith.constant 0.000000e+00 : f32
    %22 = vector.broadcast %cst_17 : f32 to vector<16x128xf32>
    %23 = arith.maximumf %21, %22 : vector<16x128xf32>
    %24 = arith.truncf %23 : vector<16x128xf32> to vector<16x128xbf16>
    %c0_18 = arith.constant 0 : index
    %c0_19 = arith.constant 0 : index
    %25 = vector.load %arg8[%c0_18, %c0_19] : memref<128x256xbf16, #tpu.memory_space<vmem>>, vector<128x256xbf16>
    %cst_20 = arith.constant dense<0.000000e+00> : vector<16x256xf32>
    %26 = tpu.matmul %24, %25, %cst_20 {dimension_numbers = #tpu.dot_dimension_numbers<[1], [0], [0], [1], [0, 0, 1, 1], [], []>} : vector<16x128xbf16>, vector<128x256xbf16>, vector<16x256xf32> -> vector<16x256xf32>
    %c0_21 = arith.constant 0 : index
    %c0_22 = arith.constant 0 : index
    %27 = vector.load %arg9[%c0_21, %c0_22] : memref<1x256xf32, #tpu.memory_space<vmem>>, vector<1x256xf32>
    %28 = vector.broadcast %27 : vector<1x256xf32> to vector<16x256xf32>
    %29 = arith.addf %26, %28 : vector<16x256xf32>
    %cst_23 = arith.constant 0.000000e+00 : f32
    %30 = vector.broadcast %cst_23 : f32 to vector<16x256xf32>
    %31 = arith.maximumf %29, %30 : vector<16x256xf32>
    %32 = arith.truncf %31 : vector<16x256xf32> to vector<16x256xbf16>
    %c0_24 = arith.constant 0 : index
    %c0_25 = arith.constant 0 : index
    %33 = vector.load %arg10[%c0_24, %c0_25] : memref<256x128xbf16, #tpu.memory_space<vmem>>, vector<256x128xbf16>
    %cst_26 = arith.constant dense<0.000000e+00> : vector<16x128xf32>
    %34 = tpu.matmul %32, %33, %cst_26 {dimension_numbers = #tpu.dot_dimension_numbers<[1], [0], [0], [1], [0, 0, 1, 1], [], []>} : vector<16x256xbf16>, vector<256x128xbf16>, vector<16x128xf32> -> vector<16x128xf32>
    %c0_27 = arith.constant 0 : index
    %c0_28 = arith.constant 0 : index
    %35 = vector.load %arg11[%c0_27, %c0_28] : memref<1x128xf32, #tpu.memory_space<vmem>>, vector<1x128xf32>
    %36 = vector.broadcast %35 : vector<1x128xf32> to vector<16x128xf32>
    %37 = arith.addf %34, %36 : vector<16x128xf32>
    %c0_29 = arith.constant 0 : index
    %c0_30 = arith.constant 0 : index
    %38 = vector.load %arg12[%c0_29, %c0_30] : memref<16x128xf32, #tpu.memory_space<vmem>>, vector<16x128xf32>
    tpu.vector_store %arg12[%c0_29, %c0_30], %37 {strides = array<i32>} : memref<16x128xf32, #tpu.memory_space<vmem>>, vector<16x128xf32>,
    return
  }
  func.func @transform_0(%arg0: i32) -> (i32, i32) {
    %c0_i32 = arith.constant 0 : i32
    %c0_i32_0 = arith.constant 0 : i32
    return %arg0, %c0_i32 : i32, i32
  }
  func.func @transform_1(%arg0: i32) -> (i32, i32) {
    %c0_i32 = arith.constant 0 : i32
    %c0_i32_0 = arith.constant 0 : i32
    %c0_i32_1 = arith.constant 0 : i32
    return %c0_i32, %c0_i32_0 : i32, i32
  }
  func.func @transform_2(%arg0: i32) -> (i32, i32) {
    %c0_i32 = arith.constant 0 : i32
    %c0_i32_0 = arith.constant 0 : i32
    %c0_i32_1 = arith.constant 0 : i32
    return %c0_i32, %c0_i32_0 : i32, i32
  }
  func.func @transform_3(%arg0: i32) -> (i32, i32) {
    %c0_i32 = arith.constant 0 : i32
    %c0_i32_0 = arith.constant 0 : i32
    %c0_i32_1 = arith.constant 0 : i32
    return %c0_i32, %c0_i32_0 : i32, i32
  }
  func.func @transform_4(%arg0: i32) -> (i32, i32) {
    %c0_i32 = arith.constant 0 : i32
    %c0_i32_0 = arith.constant 0 : i32
    %c0_i32_1 = arith.constant 0 : i32
    return %c0_i32, %c0_i32_0 : i32, i32
  }
  func.func @transform_5(%arg0: i32) -> (i32, i32) {
    %c0_i32 = arith.constant 0 : i32
    %c0_i32_0 = arith.constant 0 : i32
    %c0_i32_1 = arith.constant 0 : i32
    return %c0_i32, %c0_i32_0 : i32, i32
  }
  func.func @transform_6(%arg0: i32) -> (i32, i32) {
    %c0_i32 = arith.constant 0 : i32
    %c0_i32_0 = arith.constant 0 : i32
    %c0_i32_1 = arith.constant 0 : i32
    return %c0_i32, %c0_i32_0 : i32, i32
  }
  func.func @transform_7(%arg0: i32) -> (i32, i32) {
    %c0_i32 = arith.constant 0 : i32
    %c0_i32_0 = arith.constant 0 : i32
    %c0_i32_1 = arith.constant 0 : i32
    return %c0_i32, %c0_i32_0 : i32, i32
  }
  func.func @transform_8(%arg0: i32) -> (i32, i32) {
    %c0_i32 = arith.constant 0 : i32
    %c0_i32_0 = arith.constant 0 : i32
    %c0_i32_1 = arith.constant 0 : i32
    return %c0_i32, %c0_i32_0 : i32, i32
  }
  func.func @transform_9(%arg0: i32) -> (i32, i32) {
    %c0_i32 = arith.constant 0 : i32
    %c0_i32_0 = arith.constant 0 : i32
    %c0_i32_1 = arith.constant 0 : i32
    return %c0_i32, %c0_i32_0 : i32, i32
  }
  func.func @transform_10(%arg0: i32) -> (i32, i32) {
    %c0_i32 = arith.constant 0 : i32
    %c0_i32_0 = arith.constant 0 : i32
    %c0_i32_1 = arith.constant 0 : i32
    return %c0_i32, %c0_i32_0 : i32, i32
  }
  func.func @transform_11(%arg0: i32) -> (i32, i32) {
    %c0_i32 = arith.constant 0 : i32
    %c0_i32_0 = arith.constant 0 : i32
    return %arg0, %c0_i32 : i32, i32
  }
}

</mosaic_0001>

<bundles_post_ra>
// kernel: tpu_custom_call.1
= control target key start
LH: loop header
LB: loop body
LE: loop exit
PB: predicated region body
PF: predicated region fallthrough
CT: control target
= control target key end

     0   :  { %16 = vsyncpa [#allocation3], 0  ;;  %s1481_s0 = inlined_call_operand.hbm [shape: bf16[16,128], index: 0, kind: input, shape index: {}]   ;;  %s1482_s1 = inlined_call_operand.hbm [shape: bf16[128,128], index: 1, kind: input, shape index: {}]   ;;  %s1483_s2 = inlined_call_operand.vmem [shape: f32[1,128], index: 2, kind: input, shape index: {}]   ;;  %s1484_s3 = inlined_call_operand.hbm [shape: bf16[128,128], index: 3, kind: input, shape index: {}]   ;;  %s1485_s4 = inlined_call_operand.vmem [shape: f32[1,128], index: 4, kind: input, shape index: {}]   ;;  %s1486_s5 = inlined_call_operand.hbm [shape: bf16[128,128], index: 5, kind: input, shape index: {}]   ;;  %s1487_s6 = inlined_call_operand.vmem [shape: f32[1,128], index: 6, kind: input, shape index: {}]   ;;  %s1488_s7 = inlined_call_operand.hbm [shape: bf16[128,256], index: 7, kind: input, shape index: {}]   ;;  %s1489_s8 = inlined_call_operand.vmem [shape: f32[1,256], index: 8, kind: input, shape index: {}]   ;;  %s1490_s9 = inlined_call_operand.hbm [shape: bf16[256,128], index: 9, kind: input, shape index: {}]   ;;  %s1491_s10 = inlined_call_operand.vmem [shape: f32[1,128], index: 10, kind: input, shape index: {}]   ;;  %s1492_s11 = inlined_call_operand.hbm [shape: f32[16,128], index: 11, kind: output, shape index: {}]  }
   0x1   :  { %17 = vsyncpa [#allocation6], 0 }
   0x2   :  { %18 = vsyncpa [#allocation9], 0 }
   0x3   :  { %19 = vsyncpa [#allocation12], 0 }
   0x4   :  { %20 = vsyncpa [#allocation4], 0  ;;  %s1243_s17 = smov [#allocation5]   ;;  %s1244_s19 = smov [#allocation8]  }
   0x5   :  { %s38_s18 = sshll.u32 %s1243_s17, 4  ;;  %s66_s20 = sshll.u32 %s1244_s19, 4  ;;  %s39_s18 = int_to_ptr.vmem [resolvable:$true] %s38_s18  ;;  %s1317_s20 = int_to_ptr.vmem [resolvable:$true] %s66_s20 }
   0x6   :  { %s1079_s23 = scalar_lea.hbm %s1482_s1, 1024 }
   0x7   :  { %p1080_p0 = scmp.ne.s32.totalorder %s1482_s1, %s1079_s23  ;;  %p1083_p1 = scmp.lt.u32.totalorder %s1079_s23, %s1482_s1 }
   0x9   :  { %p1085_p2 = pnand %p1083_p1, %p1080_p0 }
   0xb   :  { %1088 = shalt.err (!%p1085_p2)
}
   0xc   :  { %s1089_s28 = scalar_lea.vmem %s39_s18, 1024  ;;  %p1094_p4 = scmp.lt.s32.totalorder %s39_s18, %s39_s18 }
   0xd   :  { %p1090_p3 = scmp.ne.s32.totalorder %s39_s18, %s1089_s28  ;;  %p1095_p5 = scmp.lt.s32.totalorder %s1089_s28, %s1089_s28 }
   0xf   :  { %p1096_p6 = por %p1095_p5, %p1094_p4 }
  0x11   :  { %p1097_p7 = pnand %p1096_p6, %p1090_p3 }
  0x13   :  { %1100 = shalt.err (!%p1097_p7)
}
  0x14   :  { %s1245_s29 = smov 64   ;;  %s1246_s30 = smov 4  }
  0x15   :  { %44 = dma.hbm_to_vmem [thread:$0]  %s1482_s1, 1024, %s39_s18, [#allocation6], %s1245_s29, %s1245_s29, %s1246_s30  }
  0x16   :  { %s1101_s16 = scalar_lea.hbm %s1486_s5, 1024 }
  0x17   :  { %p1102_p8 = scmp.ne.s32.totalorder %s1486_s5, %s1101_s16  ;;  %p1105_p9 = scmp.lt.u32.totalorder %s1101_s16, %s1486_s5 }
  0x19   :  { %p1107_p10 = pnand %p1105_p9, %p1102_p8 }
  0x1b   :  { %1110 = shalt.err (!%p1107_p10)
}
  0x1c   :  { %s1111_s23 = scalar_lea.vmem %s1317_s20, 1024  ;;  %p1116_p12 = scmp.lt.s32.totalorder %s1317_s20, %s1317_s20 }
  0x1d   :  { %p1112_p11 = scmp.ne.s32.totalorder %s1317_s20, %s1111_s23  ;;  %p1117_p13 = scmp.lt.s32.totalorder %s1111_s23, %s1111_s23 }
  0x1f   :  { %p1118_p0 = por %p1117_p13, %p1116_p12 }
  0x21   :  { %p1119_p1 = pnand %p1118_p0, %p1112_p11 }
  0x23   :  { %1122 = shalt.err (!%p1119_p1)
}
  0x24   :  { %72 = dma.hbm_to_vmem [thread:$0]  %s1486_s5, 1024, %s1317_s20, [#allocation9], %s1245_s29, %s1245_s29, %s1246_s30  }
  0x25   :  { %s1247_s24 = smov [#allocation2]   ;;  %s1248_s26 = smov [#allocation7]  }
  0x26   :  { %s26_s25 = sshll.u32 %s1247_s24, 4  ;;  %s52_s27 = sshll.u32 %s1248_s26, 4  ;;  %s27_s25 = int_to_ptr.vmem [resolvable:$true] %s26_s25  ;;  %s1354_s27 = int_to_ptr.vmem [resolvable:$true] %s52_s27 }
  0x27   :  { %s1123_s13 = scalar_lea.hbm %s1481_s0, 128 }
  0x28   :  { %p1124_p2 = scmp.ne.s32.totalorder %s1481_s0, %s1123_s13  ;;  %p1127_p3 = scmp.lt.u32.totalorder %s1123_s13, %s1481_s0 }
  0x2a   :  { %p1129_p4 = pnand %p1127_p3, %p1124_p2 }
  0x2c   :  { %1132 = shalt.err (!%p1129_p4)
}
  0x2d   :  { %s1133_s5 = scalar_lea.vmem %s27_s25, 128  ;;  %p1138_p6 = scmp.lt.s32.totalorder %s27_s25, %s27_s25 }
  0x2e   :  { %p1134_p5 = scmp.ne.s32.totalorder %s27_s25, %s1133_s5  ;;  %p1139_p7 = scmp.lt.s32.totalorder %s1133_s5, %s1133_s5 }
  0x30   :  { %p1140_p8 = por %p1139_p7, %p1138_p6 }
  0x32   :  { %p1141_p9 = pnand %p1140_p8, %p1134_p5 }
  0x34   :  { %1144 = shalt.err (!%p1141_p9)
}
  0x35   :  { %32 = dma.hbm_to_vmem [thread:$0]  %s1481_s0, 128, %s27_s25, [#allocation3], %s1245_s29, %s1245_s29, %s1246_s30  }
  0x36   :  { %s1145_s23 = scalar_lea.hbm %s1484_s3, 1024 }
  0x37   :  { %p1146_p10 = scmp.ne.s32.totalorder %s1484_s3, %s1145_s23  ;;  %p1149_p11 = scmp.lt.u32.totalorder %s1145_s23, %s1484_s3 }
  0x39   :  { %p1151_p12 = pnand %p1149_p11, %p1146_p10 }
  0x3b   :  { %1154 = shalt.err (!%p1151_p12)
}
  0x3c   :  { %s1155_s28 = scalar_lea.vmem %s1354_s27, 1024  ;;  %p1160_p0 = scmp.lt.s32.totalorder %s1354_s27, %s1354_s27 }
  0x3d   :  { %p1156_p13 = scmp.ne.s32.totalorder %s1354_s27, %s1155_s28  ;;  %p1161_p1 = scmp.lt.s32.totalorder %s1155_s28, %s1155_s28 }
  0x3f   :  { %p1162_p2 = por %p1161_p1, %p1160_p0 }
  0x41   :  { %p1163_p3 = pnand %p1162_p2, %p1156_p13 }
  0x43   :  { %1166 = shalt.err (!%p1163_p3)
}
  0x44   :  { %58 = dma.hbm_to_vmem [thread:$0]  %s1484_s3, 1024, %s1354_s27, [#allocation6], %s1245_s29, %s1245_s29, %s1246_s30  }
  0x45   :  { %s1249_s12 = smov [#allocation10]   ;;  %s1167_s16 = scalar_lea.hbm %s1488_s7, 2048 }
  0x46   :  { %s80_s13 = sshll.u32 %s1249_s12, 4  ;;  %p1168_p4 = scmp.ne.s32.totalorder %s1488_s7, %s1167_s16  ;;  %s81_s13 = int_to_ptr.vmem [resolvable:$true] %s80_s13 }
  0x47   :  { %p1171_p5 = scmp.lt.u32.totalorder %s1167_s16, %s1488_s7 }
  0x49   :  { %p1173_p6 = pnand %p1171_p5, %p1168_p4 }
  0x4b   :  { %1176 = shalt.err (!%p1173_p6)
}
  0x4c   :  { %s1177_s21 = scalar_lea.vmem %s81_s13, 2048  ;;  %p1182_p8 = scmp.lt.s32.totalorder %s81_s13, %s81_s13 }
  0x4d   :  { %p1178_p7 = scmp.ne.s32.totalorder %s81_s13, %s1177_s21  ;;  %p1183_p9 = scmp.lt.s32.totalorder %s1177_s21, %s1177_s21 }
  0x4f   :  { %p1184_p10 = por %p1183_p9, %p1182_p8 }
  0x51   :  { %p1185_p11 = pnand %p1184_p10, %p1178_p7 }
  0x53   :  { %1188 = shalt.err (!%p1185_p11)
}
  0x54   :  { %s1250_s3 = smov 128   ;;  %s1251_s27 = smov 8  }
  0x55   :  { %86 = dma.hbm_to_vmem [thread:$0]  %s1488_s7, 2048, %s81_s13, [#allocation9], %s1250_s3, %s1250_s3, %s1251_s27  }
  0x56   :  { %s1252_s1 = smov [#allocation11]   ;;  %s1189_s28 = scalar_lea.hbm %s1490_s9, 2048 }
  0x57   :  { %s94_s18 = sshll.u32 %s1252_s1, 4  ;;  %p1190_p12 = scmp.ne.s32.totalorder %s1490_s9, %s1189_s28  ;;  %s95_s18 = int_to_ptr.vmem [resolvable:$true] %s94_s18 }
  0x58   :  { %p1193_p13 = scmp.lt.u32.totalorder %s1189_s28, %s1490_s9 }
  0x5a   :  { %p1195_p0 = pnand %p1193_p13, %p1190_p12 }
  0x5c   :  { %1198 = shalt.err (!%p1195_p0)
}
  0x5d   :  { %s1199_s15 = scalar_lea.vmem %s95_s18, 2048  ;;  %p1204_p2 = scmp.lt.s32.totalorder %s95_s18, %s95_s18 }
  0x5e   :  { %p1200_p1 = scmp.ne.s32.totalorder %s95_s18, %s1199_s15  ;;  %p1205_p3 = scmp.lt.s32.totalorder %s1199_s15, %s1199_s15 }
  0x60   :  { %p1206_p4 = por %p1205_p3, %p1204_p2 }
  0x62   :  { %p1207_p5 = pnand %p1206_p4, %p1200_p1 }
  0x64   :  { %1210 = shalt.err (!%p1207_p5)
}
  0x65   :  { %100 = dma.hbm_to_vmem [thread:$0]  %s1490_s9, 2048, %s95_s18, [#allocation12], %s1245_s29, %s1245_s29, %s1246_s30  }
  0x66   :  { %1233 = dma.done.wait [#allocation3], 128  }
  0x67   :  { %1234 = vsyncadd [#allocation3], 4294967168 }
  0x68   :  { %1235 = dma.done.wait [#allocation6], 2048  }
  0x69   :  { %1236 = vsyncadd [#allocation6], 4294965248 }
  0x6a   :  { %1237 = dma.done.wait [#allocation9], 3072  }
  0x6b   :  { %1238 = vsyncadd [#allocation9], 4294964224 }
  0x6c   :  { %1239 = dma.done.wait [#allocation12], 2048  }
  0x6d   :  { %1240 = vsyncadd [#allocation12], 4294965248  ;;  %v1253_v0 = vmov 0.0   ;;  %vm1254_vm0 = vmmov 0   ;;  %v1014_v1 = vld [vmem:[#allocation5] sm:$0xff]   ;;  %v1015_v2 = vld [vmem:[#allocation5 + $0x8] sm:$0xff]  }
  0x6e   :  { %940 = vmatprep.subr.bf16.mxu0 %v1253_v0  ;;  %956 = vmatprep.mubr.msk.bf16.mxu0 %vm1254_vm0, %v1253_v0  ;;  %v1016_v3 = vld [vmem:[#allocation5 + $0x10] sm:$0xff]   ;;  %v1023_v4 = vld [vmem:[#allocation7] sm:$0xff]   ;;  %v1017_v5 = vld [vmem:[#allocation5 + $0x18] sm:$0xff]   ;;  %v1255_v62 = vmov 0   ;;  %s1256_s20 = smov [#allocation13]  }
  0x6f   :  { %960 = vmatprep.subr.bf16.mxu1 %v1253_v0  ;;  %976 = vmatprep.mubr.msk.bf16.mxu1 %vm1254_vm0, %v1253_v0  ;;  %v1024_v6 = vld [vmem:[#allocation7 + $0x8] sm:$0xff]   ;;  %v1018_v7 = vld [vmem:[#allocation5 + $0x20] sm:$0xff]   ;;  %v1025_v8 = vld [vmem:[#allocation7 + $0x10] sm:$0xff]   ;;  %s815_s19 = sshll.u32 %s1256_s20, 4  ;;  %s816_s19 = int_to_ptr.vmem [resolvable:$true] %s815_s19 }
  0x70   :  { %941 = vmatpush3.bf16.msra.mxu0 %v1014_v1  ;;  %961 = vmatpush3.bf16.msra.mxu1 %v1023_v4  ;;  %v1019_v9 = vld [vmem:[#allocation5 + $0x28] sm:$0xff]   ;;  %v1026_v10 = vld [vmem:[#allocation7 + $0x18] sm:$0xff]   ;;  %v1020_v11 = vld [vmem:[#allocation5 + $0x30] sm:$0xff]   ;;  %s1211_s21 = scalar_lea.vmem %s816_s19, 256  ;;  %p1216_p7 = scmp.lt.s32.totalorder %s816_s19, %s816_s19 }
  0x71   :  { %942 = vmatprep.subr.bf16.mxu0 %v1253_v0  ;;  %962 = vmatprep.subr.bf16.mxu1 %v1253_v0  ;;  %v1027_v12 = vld [vmem:[#allocation7 + $0x20] sm:$0xff]   ;;  %v1021_v13 = vld [vmem:[#allocation5 + $0x38] sm:$0xff]   ;;  %v1028_v14 = vld [vmem:[#allocation7 + $0x28] sm:$0xff]   ;;  %p1212_p6 = scmp.ne.s32.totalorder %s816_s19, %s1211_s21  ;;  %p1217_p8 = scmp.lt.s32.totalorder %s1211_s21, %s1211_s21 }
  0x72   :  { %v1022_v15 = vld [vmem:[#allocation2] sm:$0xff]   ;;  %v1029_v16 = vld [vmem:[#allocation7 + $0x30] sm:$0xff]   ;;  %v1031_v18 = vld [vmem:[#allocation8] sm:$0xff]  }
  0x73   :  { %v1030_v17 = vld [vmem:[#allocation7 + $0x38] sm:$0xff]   ;;  %v1032_v19 = vld [vmem:[#allocation8 + $0x8] sm:$0xff]   ;;  %v1033_v20 = vld [vmem:[#allocation8 + $0x10] sm:$0xff]   ;;  %p1218_p9 = por %p1217_p8, %p1216_p7 }
  0x74   :  { %943 = vmatpush3.bf16.msra.mxu0 %v1015_v2  ;;  %963 = vmatpush3.bf16.msra.mxu1 %v1024_v6  ;;  %v1034_v21 = vld [vmem:[#allocation8 + $0x18] sm:$0xff]   ;;  %v1035_v22 = vld [vmem:[#allocation8 + $0x20] sm:$0xff]   ;;  %v1036_v23 = vld [vmem:[#allocation8 + $0x28] sm:$0xff]  }
  0x75   :  { %944 = vmatprep.subr.bf16.mxu0 %v1253_v0  ;;  %964 = vmatprep.subr.bf16.mxu1 %v1253_v0  ;;  %v830_v24 = vld [vmem:[%s1483_s2] ss:$0 sm:$0xff]  ;;  %v1037_v34 = vld [vmem:[#allocation8 + $0x30] sm:$0xff]   ;;  %v1039_v36 = vld [vmem:[#allocation10] ss:$8 sps:$4 sm:$0xff]   ;;  %p1219_p10 = pnand %p1218_p9, %p1212_p6 }
  0x76   :  { %v1038_v35 = vld [vmem:[#allocation8 + $0x38] sm:$0xff]   ;;  %v1041_v37 = vld [vmem:[#allocation10 + $0x4] ss:$8 sps:$4 sm:$0xff]   ;;  %v1045_v41 = vld [vmem:[#allocation10 + $0x20] ss:$8 sps:$4 sm:$0xff]  }
  0x77   :  { %v1044_v38 = vld [vmem:[#allocation10 + $0x14] ss:$8 sps:$4 sm:$0xff]   ;;  %v1042_v39 = vld [vmem:[#allocation10 + $0x10] ss:$8 sps:$4 sm:$0xff]   ;;  %v1047_v40 = vld [vmem:[#allocation10 + $0x24] ss:$8 sps:$4 sm:$0xff]  }
  0x78   :  { %945 = vmatpush3.bf16.msra.mxu0 %v1016_v3  ;;  %965 = vmatpush3.bf16.msra.mxu1 %v1025_v8  ;;  %v1050_v42 = vld [vmem:[#allocation10 + $0x34] ss:$8 sps:$4 sm:$0xff]   ;;  %v1048_v43 = vld [vmem:[#allocation10 + $0x30] ss:$8 sps:$4 sm:$0xff]   ;;  %v1053_v44 = vld [vmem:[#allocation10 + $0x44] ss:$8 sps:$4 sm:$0xff]  }
  0x79   :  { %946 = vmatprep.subr.bf16.mxu0 %v1253_v0  ;;  %966 = vmatprep.subr.bf16.mxu1 %v1253_v0  ;;  %v1051_v45 = vld [vmem:[#allocation10 + $0x40] ss:$8 sps:$4 sm:$0xff]   ;;  %v1056_v46 = vld [vmem:[#allocation10 + $0x54] ss:$8 sps:$4 sm:$0xff]   ;;  %v1054_v47 = vld [vmem:[#allocation10 + $0x50] ss:$8 sps:$4 sm:$0xff]  }
  0x7a   :  { %v840_v48 = vld [vmem:[%s1485_s4] ss:$0 sm:$0xff]  ;;  %v1059_v58 = vld [vmem:[#allocation10 + $0x64] ss:$8 sps:$4 sm:$0xff]   ;;  %v1057_v59 = vld [vmem:[#allocation10 + $0x60] ss:$8 sps:$4 sm:$0xff]  }
  0x7b   :  { %v1062_v60 = vld [vmem:[#allocation10 + $0x74] ss:$8 sps:$4 sm:$0xff]   ;;  %v1060_v61 = vld [vmem:[#allocation10 + $0x70] ss:$8 sps:$4 sm:$0xff]   ;;  %v1063_v63 = vld [vmem:[#allocation11 + $0x40] sm:$0xff]  }
  0x7c   :  { %947 = vmatpush3.bf16.msra.mxu0 %v1017_v5  ;;  %967 = vmatpush3.bf16.msra.mxu1 %v1026_v10  ;;  %v1065_v1 = vld [vmem:[#allocation11 + $0x48] sm:$0xff]   ;;  %v1067_v3 = vld [vmem:[#allocation11 + $0x50] sm:$0xff]   ;;  %v1069_v5 = vld [vmem:[#allocation11 + $0x58] sm:$0xff]  }
  0x7d   :  { %948 = vmatprep.subr.bf16.mxu0 %v1253_v0  ;;  %968 = vmatprep.subr.bf16.mxu1 %v1253_v0  ;;  %v1066_v2 = vld [vmem:[#allocation11 + $0x8] sm:$0xff]   ;;  %v1068_v4 = vld [vmem:[#allocation11 + $0x10] sm:$0xff]   ;;  %v1070_v6 = vld [vmem:[#allocation11 + $0x18] sm:$0xff]  }
  0x7e   :  { %v1072_v8 = vld [vmem:[#allocation11 + $0x20] sm:$0xff]   ;;  %v849_v10 = vld [vmem:[%s1487_s6] ss:$0 sm:$0xff] }
  0x80   :  { %949 = vmatpush3.bf16.msra.mxu0 %v1018_v7  ;;  %969 = vmatpush3.bf16.msra.mxu1 %v1027_v12  ;;  %v1071_v7 = vld [vmem:[#allocation11 + $0x60] sm:$0xff]  }
  0x81   :  { %950 = vmatprep.subr.bf16.mxu0 %v1253_v0  ;;  %970 = vmatprep.subr.bf16.mxu1 %v1253_v0 }
  0x84   :  { %951 = vmatpush3.bf16.msra.mxu0 %v1019_v9  ;;  %971 = vmatpush3.bf16.msra.mxu1 %v1028_v14  ;;  %v1073_v9 = vld [vmem:[#allocation11 + $0x68] sm:$0xff]  }
  0x85   :  { %952 = vmatprep.subr.bf16.mxu0 %v1253_v0  ;;  %972 = vmatprep.subr.bf16.mxu1 %v1253_v0 }
  0x88   :  { %953 = vmatpush3.bf16.msra.mxu0 %v1020_v11  ;;  %973 = vmatpush3.bf16.msra.mxu1 %v1029_v16 }
  0x89   :  { %954 = vmatprep.subr.bf16.mxu0 %v1253_v0  ;;  %974 = vmatprep.subr.bf16.mxu1 %v1253_v0 }
  0x8c   :  { %955 = vmatpush3.bf16.msra.mxu0 %v1021_v13  ;;  %975 = vmatpush3.bf16.msra.mxu1 %v1030_v17 }
  0x8d   :  { %980 = vmatprep.subr.bf16.mxu0 %v1253_v0  ;;  %583 = vmatprep.subr.bf16.mxu1 %v1041_v37 }
  0x8f   :  { %957 = vmatmul.mubr.bf16.vlgmr.msra.gmra.mrb[0].mxu0 %v1022_v15 }
  0x90   :  { %996 = vmatprep.mubr.msk.bf16.mxu0 %vm1254_vm0, %v1253_v0  ;;  %981 = vmatpush3.bf16.msra.mxu0 %v1031_v18 }
  0x91   :  { %982 = vmatprep.subr.bf16.mxu0 %v1253_v0 }
  0x94   :  { %983 = vmatpush3.bf16.msra.mxu0 %v1032_v19 }
  0x95   :  { %984 = vmatprep.subr.bf16.mxu0 %v1253_v0 }
  0x98   :  { %985 = vmatpush3.bf16.msra.mxu0 %v1033_v20  ;;  %v1074_v20 = vld [vmem:[#allocation11 + $0x28] sm:$0xff]  }
  0x99   :  { %986 = vmatprep.subr.bf16.mxu0 %v1253_v0 }
  0x9c   :  { %987 = vmatpush3.bf16.msra.mxu0 %v1034_v21  ;;  %v1075_v21 = vld [vmem:[#allocation11 + $0x70] sm:$0xff]  }
  0x9d   :  { %988 = vmatprep.subr.bf16.mxu0 %v1253_v0 }
  0xa0   :  { %989 = vmatpush3.bf16.msra.mxu0 %v1035_v22  ;;  %v1076_v22 = vld [vmem:[#allocation11 + $0x30] sm:$0xff]  }
  0xa1   :  { %990 = vmatprep.subr.bf16.mxu0 %v1253_v0 }
  0xa4   :  { %991 = vmatpush3.bf16.msra.mxu0 %v1036_v23  ;;  %v1077_v23 = vld [vmem:[#allocation11 + $0x78] sm:$0xff]  }
  0xa5   :  { %992 = vmatprep.subr.bf16.mxu0 %v1253_v0 }
  0xa8   :  { %993 = vmatpush3.bf16.msra.mxu0 %v1037_v34 }
  0xa9   :  { %994 = vmatprep.subr.bf16.mxu0 %v1253_v0  ;;  %v1064_v0 = vld [vmem:[#allocation11] sm:$0xff]  }
  0xac   :  { %995 = vmatpush3.bf16.msra.mxu0 %v1038_v35 }
  0xad   :  { %918 = vmatprep.subr.bf16.mxu0 %v1063_v63 }
 0x162   :  { %v235_v25 = vpop.f32.mrb[0].mxu0 }
 0x163   :  { %v236_v26 = vadd.f32 %v830_v24, %v235_v25  ;;  %v958_v27 = vpop.f32.mrb[1].mxu0  ;;  %v493_v25 = vlaneseq }
 0x164   :  { %v238_v28 = vpop.f32.mrb[2].mxu0 }
 0x165   :  { %v239_v29 = vadd.f32 %v830_v24, %v238_v28  ;;  %v959_v30 = vpop.f32.mrb[3].mxu0  ;;  %v242_v31 = vmax.f32 %v236_v26, 0.0  ;;  %v1078_v24 = vld [vmem:[#allocation11 + $0x38] sm:$0xff]   ;;  %v494_v26 = vshrl.u32 %v493_v25, 7 }
 0x166   :  { %v491_v28 = vld [vmem:[%s1489_s8] sm:$0x3] }
 0x167   :  { %v243_v32 = vmax.f32 %v239_v29, 0.0  ;;  %v495_v27 = vsub.s32 0, %v494_v26  ;;  %v499_v29 = vsub.s32 1, %v494_v26 }
 0x169   :  { %v244_v33 = vpack.c.bf16 %v243_v32, %v242_v31  ;;  %v496_v30 = vrot.slane %v491_v28, %v495_v27  ;;  %v500_v31 = vrot.slane %v491_v28, %v499_v29 }
 0x16b   :  { %977 = vmatmul.mubr.bf16.vlgmr.msra.gmra.mrb[0].mxu1 %v244_v33 }
 0x16c   :  { %584 = vmatpush1.bf16.msra.mxu1 %v1039_v36  ;;  %615 = vmatprep.mubr.bf16.mxu1 %v1255_v62 }
 0x16d   :  { %585 = vmatprep.subr.bf16.mxu1 %v1044_v38 }
 0x170   :  { %586 = vmatpush1.bf16.msra.mxu1 %v1042_v39 }
 0x171   :  { %587 = vmatprep.subr.bf16.mxu1 %v1047_v40 }
 0x174   :  { %588 = vmatpush1.bf16.msra.mxu1 %v1045_v41 }
 0x175   :  { %589 = vmatprep.subr.bf16.mxu1 %v1050_v42 }
 0x178   :  { %590 = vmatpush1.bf16.msra.mxu1 %v1048_v43 }
 0x179   :  { %591 = vmatprep.subr.bf16.mxu1 %v1053_v44 }
 0x17c   :  { %592 = vmatpush1.bf16.msra.mxu1 %v1051_v45 }
 0x17d   :  { %593 = vmatprep.subr.bf16.mxu1 %v1056_v46 }
 0x180   :  { %594 = vmatpush1.bf16.msra.mxu1 %v1054_v47  ;;  %v874_v47 = vld [vmem:[%s1491_s10] ss:$0 sm:$0xff] }
 0x181   :  { %595 = vmatprep.subr.bf16.mxu1 %v1059_v58 }
 0x184   :  { %596 = vmatpush1.bf16.msra.mxu1 %v1057_v59 }
 0x185   :  { %597 = vmatprep.subr.bf16.mxu1 %v1062_v60 }
 0x188   :  { %598 = vmatpush1.bf16.msra.mxu1 %v1060_v61 }
 0x23e   :  { %v350_v49 = vpop.f32.mrb[0].mxu1 }
 0x23f   :  { %v351_v50 = vadd.f32 %v840_v48, %v350_v49  ;;  %v978_v51 = vpop.f32.mrb[1].mxu1 }
 0x240   :  { %v353_v52 = vpop.f32.mrb[2].mxu1 }
 0x241   :  { %v354_v53 = vadd.f32 %v840_v48, %v353_v52  ;;  %v979_v54 = vpop.f32.mrb[3].mxu1  ;;  %v357_v55 = vmax.f32 %v351_v50, 0.0 }
 0x243   :  { %v358_v56 = vmax.f32 %v354_v53, 0.0 }
 0x245   :  { %v359_v57 = vpack.c.bf16 %v358_v56, %v357_v55 }
 0x247   :  { %997 = vmatmul.mubr.bf16.vlgmr.msra.gmra.mrb[4].mxu0 %v359_v57 }
 0x248   :  { %919 = vmatpush3.bf16.msra.mxu0 %v1064_v0 }
 0x249   :  { %920 = vmatprep.subr.bf16.mxu0 %v1065_v1 }
 0x24c   :  { %921 = vmatpush3.bf16.msra.mxu0 %v1066_v2 }
 0x24d   :  { %922 = vmatprep.subr.bf16.mxu0 %v1067_v3 }
 0x250   :  { %923 = vmatpush3.bf16.msra.mxu0 %v1068_v4 }
 0x251   :  { %924 = vmatprep.subr.bf16.mxu0 %v1069_v5 }
 0x254   :  { %925 = vmatpush3.bf16.msra.mxu0 %v1070_v6 }
 0x255   :  { %926 = vmatprep.subr.bf16.mxu0 %v1071_v7 }
 0x258   :  { %927 = vmatpush3.bf16.msra.mxu0 %v1072_v8 }
 0x259   :  { %928 = vmatprep.subr.bf16.mxu0 %v1073_v9 }
 0x25c   :  { %929 = vmatpush3.bf16.msra.mxu0 %v1074_v20 }
 0x25d   :  { %930 = vmatprep.subr.bf16.mxu0 %v1075_v21 }
 0x260   :  { %931 = vmatpush3.bf16.msra.mxu0 %v1076_v22 }
 0x261   :  { %932 = vmatprep.subr.bf16.mxu0 %v1077_v23 }
 0x264   :  { %933 = vmatpush3.bf16.msra.mxu0 %v1078_v24 }
 0x31a   :  { %v465_v11 = vpop.f32.mrb[4].mxu0 }
 0x31b   :  { %v466_v12 = vadd.f32 %v849_v10, %v465_v11  ;;  %v998_v13 = vpop.f32.mrb[5].mxu0 }
 0x31c   :  { %v468_v14 = vpop.f32.mrb[6].mxu0 }
 0x31d   :  { %v469_v15 = vadd.f32 %v849_v10, %v468_v14  ;;  %v999_v16 = vpop.f32.mrb[7].mxu0  ;;  %v472_v17 = vmax.f32 %v466_v12, 0.0 }
 0x31f   :  { %v473_v18 = vmax.f32 %v469_v15, 0.0 }
 0x321   :  { %v474_v19 = vpack.c.bf16 %v473_v18, %v472_v17 }
 0x323   :  { %616 = vmatmul.mubr.bf16.vlgmr.msra.gmra.mrb[4].mxu1 %v474_v19 }
 0x3f6   :  { %v617_v32 = vpop.f32.mrb[4].mxu1 }
 0x3f7   :  { %v618_v33 = vadd.f32 %v617_v32, %v496_v30  ;;  %v619_v34 = vpop.f32.mrb[5].mxu1 }
 0x3f8   :  { %v620_v35 = vadd.f32 %v619_v34, %v500_v31  ;;  %v621_v36 = vpop.f32.mrb[6].mxu1 }
 0x3f9   :  { %v622_v37 = vadd.f32 %v621_v36, %v496_v30  ;;  %v623_v38 = vpop.f32.mrb[7].mxu1  ;;  %v626_v40 = vmax.f32 %v618_v33, 0.0 }
 0x3fa   :  { %v624_v39 = vadd.f32 %v623_v38, %v500_v31  ;;  %v627_v42 = vmax.f32 %v620_v35, 0.0 }
 0x3fb   :  { %v628_v41 = vmax.f32 %v622_v37, 0.0 }
 0x3fc   :  { %v629_v43 = vmax.f32 %v624_v39, 0.0 }
 0x3fd   :  { %v630_v44 = vpack.c.bf16 %v628_v41, %v626_v40 }
 0x3fe   :  { %v631_v45 = vpack.c.bf16 %v629_v43, %v627_v42 }
 0x400   :  { %799 = vmatprep.mubr.bf16.mxu0 %v631_v45 }
 0x401   :  { %800 = vmatmul.mubr.bf16.vlgmr.msra.gmra.mrb[8].mxu0 %v630_v44 }
 0x4d4   :  { %v934_v46 = vpop.f32.mrb[8].mxu0 }
 0x4d5   :  { %v935_v48 = vpop.f32.mrb[9].mxu0 }
 0x4d6   :  { %v936_v49 = vadd.f32 %v935_v48, %v934_v46  ;;  %v937_v50 = vpop.f32.mrb[10].mxu0 }
 0x4d7   :  { %v938_v51 = vpop.f32.mrb[11].mxu0 }
 0x4d8   :  { %v802_v52 = vadd.f32 %v936_v49, %v874_v47  ;;  %v939_v53 = vadd.f32 %v938_v51, %v937_v50 }
 0x4da   :  { %808 = vst [vmem:[#allocation13] sm:$0xff] %v802_v52  ;;  %v805_v54 = vadd.f32 %v939_v53, %v874_v47 }
 0x4dc   :  { %809 = vst [vmem:[#allocation13 + $0x8] sm:$0xff] %v805_v54 }
 0x4dd   :  { %1222 = shalt.err (!%p1219_p10)
}
 0x4de   :  { %s1223_s23 = scalar_lea.hbm %s1492_s11, 256 }
 0x4df   :  { %p1224_p11 = scmp.ne.s32.totalorder %s1492_s11, %s1223_s23  ;;  %p1227_p12 = scmp.lt.u32.totalorder %s1223_s23, %s1492_s11 }
 0x4e1   :  { %p1229_p13 = pnand %p1227_p12, %p1224_p11 }
 0x4e3   :  { %1232 = shalt.err (!%p1229_p13)
}
 0x4e4   :  { %821 = dma.vmem_to_hbm [thread:$0]  %s816_s19, 256, %s1492_s11, [#allocation4], %s1250_s3, %s1250_s3, %s1251_s27  }
 0x4e5   :  { %1241 = dma.done.wait [#allocation4], 256  }
 0x4e6   :  { %1242 = vsyncadd [#allocation4], 4294967040 }
 0x4e7   :  { %825 = vsyncpa [#allocation3], 1 }
 0x4e8   :  { %826 = vsyncpa [#allocation6], 1 }
 0x4e9   :  { %827 = vsyncpa [#allocation9], 1 }
 0x4ea   :  { %828 = vsyncpa [#allocation12], 1 }
 0x4eb   :  { %829 = vsyncpa [#allocation4], 1 }

// kernel: tpu_custom_call.1
= control target key start
LH: loop header
LB: loop body
LE: loop exit
PB: predicated region body
PF: predicated region fallthrough
CT: control target
= control target key end

     0   :  { %16 = vsyncpa [#allocation3], 0  ;;  %s1481_s0 = inlined_call_operand.hbm [shape: bf16[16,128], index: 0, kind: input, shape index: {}]   ;;  %s1482_s1 = inlined_call_operand.hbm [shape: bf16[128,128], index: 1, kind: input, shape index: {}]   ;;  %s1483_s2 = inlined_call_operand.vmem [shape: f32[1,128], index: 2, kind: input, shape index: {}]   ;;  %s1484_s3 = inlined_call_operand.hbm [shape: bf16[128,128], index: 3, kind: input, shape index: {}]   ;;  %s1485_s4 = inlined_call_operand.vmem [shape: f32[1,128], index: 4, kind: input, shape index: {}]   ;;  %s1486_s5 = inlined_call_operand.hbm [shape: bf16[128,128], index: 5, kind: input, shape index: {}]   ;;  %s1487_s6 = inlined_call_operand.vmem [shape: f32[1,128], index: 6, kind: input, shape index: {}]   ;;  %s1488_s7 = inlined_call_operand.hbm [shape: bf16[128,256], index: 7, kind: input, shape index: {}]   ;;  %s1489_s8 = inlined_call_operand.vmem [shape: f32[1,256], index: 8, kind: input, shape index: {}]   ;;  %s1490_s9 = inlined_call_operand.hbm [shape: bf16[256,128], index: 9, kind: input, shape index: {}]   ;;  %s1491_s10 = inlined_call_operand.vmem [shape: f32[1,128], index: 10, kind: input, shape index: {}]   ;;  %s1492_s11 = inlined_call_operand.hbm [shape: f32[16,128], index: 11, kind: output, shape index: {}]  }
   0x1   :  { %17 = vsyncpa [#allocation6], 0 }
   0x2   :  { %18 = vsyncpa [#allocation9], 0 }
   0x3   :  { %19 = vsyncpa [#allocation12], 0 }
   0x4   :  { %20 = vsyncpa [#allocation4], 0  ;;  %s1243_s17 = smov [#allocation5]   ;;  %s1244_s19 = smov [#allocation8]  }
   0x5   :  { %s38_s18 = sshll.u32 %s1243_s17, 4  ;;  %s66_s20 = sshll.u32 %s1244_s19, 4  ;;  %s39_s18 = int_to_ptr.vmem [resolvable:$true] %s38_s18  ;;  %s1317_s20 = int_to_ptr.vmem [resolvable:$true] %s66_s20 }
   0x6   :  { %s1079_s23 = scalar_lea.hbm %s1482_s1, 1024 }
   0x7   :  { %p1080_p0 = scmp.ne.s32.totalorder %s1482_s1, %s1079_s23  ;;  %p1083_p1 = scmp.lt.u32.totalorder %s1079_s23, %s1482_s1 }
   0x9   :  { %p1085_p2 = pnand %p1083_p1, %p1080_p0 }
   0xb   :  { %1088 = shalt.err (!%p1085_p2)
}
   0xc   :  { %s1089_s28 = scalar_lea.vmem %s39_s18, 1024  ;;  %p1094_p4 = scmp.lt.s32.totalorder %s39_s18, %s39_s18 }
   0xd   :  { %p1090_p3 = scmp.ne.s32.totalorder %s39_s18, %s1089_s28  ;;  %p1095_p5 = scmp.lt.s32.totalorder %s1089_s28, %s1089_s28 }
   0xf   :  { %p1096_p6 = por %p1095_p5, %p1094_p4 }
  0x11   :  { %p1097_p7 = pnand %p1096_p6, %p1090_p3 }
  0x13   :  { %1100 = shalt.err (!%p1097_p7)
}
  0x14   :  { %s1245_s29 = smov 64   ;;  %s1246_s30 = smov 4  }
  0x15   :  { %44 = dma.hbm_to_vmem [thread:$0]  %s1482_s1, 1024, %s39_s18, [#allocation6], %s1245_s29, %s1245_s29, %s1246_s30  }
  0x16   :  { %s1101_s16 = scalar_lea.hbm %s1486_s5, 1024 }
  0x17   :  { %p1102_p8 = scmp.ne.s32.totalorder %s1486_s5, %s1101_s16  ;;  %p1105_p9 = scmp.lt.u32.totalorder %s1101_s16, %s1486_s5 }
  0x19   :  { %p1107_p10 = pnand %p1105_p9, %p1102_p8 }
  0x1b   :  { %1110 = shalt.err (!%p1107_p10)
}
  0x1c   :  { %s1111_s23 = scalar_lea.vmem %s1317_s20, 1024  ;;  %p1116_p12 = scmp.lt.s32.totalorder %s1317_s20, %s1317_s20 }
  0x1d   :  { %p1112_p11 = scmp.ne.s32.totalorder %s1317_s20, %s1111_s23  ;;  %p1117_p13 = scmp.lt.s32.totalorder %s1111_s23, %s1111_s23 }
  0x1f   :  { %p1118_p0 = por %p1117_p13, %p1116_p12 }
  0x21   :  { %p1119_p1 = pnand %p1118_p0, %p1112_p11 }
  0x23   :  { %1122 = shalt.err (!%p1119_p1)
}
  0x24   :  { %72 = dma.hbm_to_vmem [thread:$0]  %s1486_s5, 1024, %s1317_s20, [#allocation9], %s1245_s29, %s1245_s29, %s1246_s30  }
  0x25   :  { %s1247_s24 = smov [#allocation2]   ;;  %s1248_s26 = smov [#allocation7]  }
  0x26   :  { %s26_s25 = sshll.u32 %s1247_s24, 4  ;;  %s52_s27 = sshll.u32 %s1248_s26, 4  ;;  %s27_s25 = int_to_ptr.vmem [resolvable:$true] %s26_s25  ;;  %s1354_s27 = int_to_ptr.vmem [resolvable:$true] %s52_s27 }
  0x27   :  { %s1123_s13 = scalar_lea.hbm %s1481_s0, 128 }
  0x28   :  { %p1124_p2 = scmp.ne.s32.totalorder %s1481_s0, %s1123_s13  ;;  %p1127_p3 = scmp.lt.u32.totalorder %s1123_s13, %s1481_s0 }
  0x2a   :  { %p1129_p4 = pnand %p1127_p3, %p1124_p2 }
  0x2c   :  { %1132 = shalt.err (!%p1129_p4)
}
  0x2d   :  { %s1133_s5 = scalar_lea.vmem %s27_s25, 128  ;;  %p1138_p6 = scmp.lt.s32.totalorder %s27_s25, %s27_s25 }
  0x2e   :  { %p1134_p5 = scmp.ne.s32.totalorder %s27_s25, %s1133_s5  ;;  %p1139_p7 = scmp.lt.s32.totalorder %s1133_s5, %s1133_s5 }
  0x30   :  { %p1140_p8 = por %p1139_p7, %p1138_p6 }
  0x32   :  { %p1141_p9 = pnand %p1140_p8, %p1134_p5 }
  0x34   :  { %1144 = shalt.err (!%p1141_p9)
}
  0x35   :  { %32 = dma.hbm_to_vmem [thread:$0]  %s1481_s0, 128, %s27_s25, [#allocation3], %s1245_s29, %s1245_s29, %s1246_s30  }
  0x36   :  { %s1145_s23 = scalar_lea.hbm %s1484_s3, 1024 }
  0x37   :  { %p1146_p10 = scmp.ne.s32.totalorder %s1484_s3, %s1145_s23  ;;  %p1149_p11 = scmp.lt.u32.totalorder %s1145_s23, %s1484_s3 }
  0x39   :  { %p1151_p12 = pnand %p1149_p11, %p1146_p10 }
  0x3b   :  { %1154 = shalt.err (!%p1151_p12)
}
  0x3c   :  { %s1155_s28 = scalar_lea.vmem %s1354_s27, 1024  ;;  %p1160_p0 = scmp.lt.s32.totalorder %s1354_s27, %s1354_s27 }
  0x3d   :  { %p1156_p13 = scmp.ne.s32.totalorder %s1354_s27, %s1155_s28  ;;  %p1161_p1 = scmp.lt.s32.totalorder %s1155_s28, %s1155_s28 }
  0x3f   :  { %p1162_p2 = por %p1161_p1, %p1160_p0 }
  0x41   :  { %p1163_p3 = pnand %p1162_p2, %p1156_p13 }
  0x43   :  { %1166 = shalt.err (!%p1163_p3)
}
  0x44   :  { %58 = dma.hbm_to_vmem [thread:$0]  %s1484_s3, 1024, %s1354_s27, [#allocation6], %s1245_s29, %s1245_s29, %s1246_s30  }
  0x45   :  { %s1249_s12 = smov [#allocation10]   ;;  %s1167_s16 = scalar_lea.hbm %s1488_s7, 2048 }
  0x46   :  { %s80_s13 = sshll.u32 %s1249_s12, 4  ;;  %p1168_p4 = scmp.ne.s32.totalorder %s1488_s7, %s1167_s16  ;;  %s81_s13 = int_to_ptr.vmem [resolvable:$true] %s80_s13 }
  0x47   :  { %p1171_p5 = scmp.lt.u32.totalorder %s1167_s16, %s1488_s7 }
  0x49   :  { %p1173_p6 = pnand %p1171_p5, %p1168_p4 }
  0x4b   :  { %1176 = shalt.err (!%p1173_p6)
}
  0x4c   :  { %s1177_s21 = scalar_lea.vmem %s81_s13, 2048  ;;  %p1182_p8 = scmp.lt.s32.totalorder %s81_s13, %s81_s13 }
  0x4d   :  { %p1178_p7 = scmp.ne.s32.totalorder %s81_s13, %s1177_s21  ;;  %p1183_p9 = scmp.lt.s32.totalorder %s1177_s21, %s1177_s21 }
  0x4f   :  { %p1184_p10 = por %p1183_p9, %p1182_p8 }
  0x51   :  { %p1185_p11 = pnand %p1184_p10, %p1178_p7 }
  0x53   :  { %1188 = shalt.err (!%p1185_p11)
}
  0x54   :  { %s1250_s3 = smov 128   ;;  %s1251_s27 = smov 8  }
  0x55   :  { %86 = dma.hbm_to_vmem [thread:$0]  %s1488_s7, 2048, %s81_s13, [#allocation9], %s1250_s3, %s1250_s3, %s1251_s27  }
  0x56   :  { %s1252_s1 = smov [#allocation11]   ;;  %s1189_s28 = scalar_lea.hbm %s1490_s9, 2048 }
  0x57   :  { %s94_s18 = sshll.u32 %s1252_s1, 4  ;;  %p1190_p12 = scmp.ne.s32.totalorder %s1490_s9, %s1189_s28  ;;  %s95_s18 = int_to_ptr.vmem [resolvable:$true] %s94_s18 }
  0x58   :  { %p1193_p13 = scmp.lt.u32.totalorder %s1189_s28, %s1490_s9 }
  0x5a   :  { %p1195_p0 = pnand %p1193_p13, %p1190_p12 }
  0x5c   :  { %1198 = shalt.err (!%p1195_p0)
}
  0x5d   :  { %s1199_s15 = scalar_lea.vmem %s95_s18, 2048  ;;  %p1204_p2 = scmp.lt.s32.totalorder %s95_s18, %s95_s18 }
  0x5e   :  { %p1200_p1 = scmp.ne.s32.totalorder %s95_s18, %s1199_s15  ;;  %p1205_p3 = scmp.lt.s32.totalorder %s1199_s15, %s1199_s15 }
  0x60   :  { %p1206_p4 = por %p1205_p3, %p1204_p2 }
  0x62   :  { %p1207_p5 = pnand %p1206_p4, %p1200_p1 }
  0x64   :  { %1210 = shalt.err (!%p1207_p5)
}
  0x65   :  { %100 = dma.hbm_to_vmem [thread:$0]  %s1490_s9, 2048, %s95_s18, [#allocation12], %s1245_s29, %s1245_s29, %s1246_s30  }
  0x66   :  { %1233 = dma.done.wait [#allocation3], 128  }
  0x67   :  { %1234 = vsyncadd [#allocation3], 4294967168 }
  0x68   :  { %1235 = dma.done.wait [#allocation6], 2048  }
  0x69   :  { %1236 = vsyncadd [#allocation6], 4294965248 }
  0x6a   :  { %1237 = dma.done.wait [#allocation9], 3072  }
  0x6b   :  { %1238 = vsyncadd [#allocation9], 4294964224 }
  0x6c   :  { %1239 = dma.done.wait [#allocation12], 2048  }
  0x6d   :  { %1240 = vsyncadd [#allocation12], 4294965248  ;;  %v1253_v0 = vmov 0.0   ;;  %vm1254_vm0 = vmmov 0   ;;  %v1014_v1 = vld [vmem:[#allocation5] sm:$0xff]   ;;  %v1015_v2 = vld [vmem:[#allocation5 + $0x8] sm:$0xff]  }
  0x6e   :  { %940 = vmatprep.subr.bf16.mxu0 %v1253_v0  ;;  %956 = vmatprep.mubr.msk.bf16.mxu0 %vm1254_vm0, %v1253_v0  ;;  %v1016_v3 = vld [vmem:[#allocation5 + $0x10] sm:$0xff]   ;;  %v1023_v4 = vld [vmem:[#allocation7] sm:$0xff]   ;;  %v1017_v5 = vld [vmem:[#allocation5 + $0x18] sm:$0xff]   ;;  %v1255_v62 = vmov 0   ;;  %s1256_s20 = smov [#allocation13]  }
  0x6f   :  { %960 = vmatprep.subr.bf16.mxu1 %v1253_v0  ;;  %976 = vmatprep.mubr.msk.bf16.mxu1 %vm1254_vm0, %v1253_v0  ;;  %v1024_v6 = vld [vmem:[#allocation7 + $0x8] sm:$0xff]   ;;  %v1018_v7 = vld [vmem:[#allocation5 + $0x20] sm:$0xff]   ;;  %v1025_v8 = vld [vmem:[#allocation7 + $0x10] sm:$0xff]   ;;  %s815_s19 = sshll.u32 %s1256_s20, 4  ;;  %s816_s19 = int_to_ptr.vmem [resolvable:$true] %s815_s19 }
  0x70   :  { %941 = vmatpush3.bf16.msra.mxu0 %v1014_v1  ;;  %961 = vmatpush3.bf16.msra.mxu1 %v1023_v4  ;;  %v1019_v9 = vld [vmem:[#allocation5 + $0x28] sm:$0xff]   ;;  %v1026_v10 = vld [vmem:[#allocation7 + $0x18] sm:$0xff]   ;;  %v1020_v11 = vld [vmem:[#allocation5 + $0x30] sm:$0xff]   ;;  %s1211_s21 = scalar_lea.vmem %s816_s19, 256  ;;  %p1216_p7 = scmp.lt.s32.totalorder %s816_s19, %s816_s19 }
  0x71   :  { %942 = vmatprep.subr.bf16.mxu0 %v1253_v0  ;;  %962 = vmatprep.subr.bf16.mxu1 %v1253_v0  ;;  %v1027_v12 = vld [vmem:[#allocation7 + $0x20] sm:$0xff]   ;;  %v1021_v13 = vld [vmem:[#allocation5 + $0x38] sm:$0xff]   ;;  %v1028_v14 = vld [vmem:[#allocation7 + $0x28] sm:$0xff]   ;;  %p1212_p6 = scmp.ne.s32.totalorder %s816_s19, %s1211_s21  ;;  %p1217_p8 = scmp.lt.s32.totalorder %s1211_s21, %s1211_s21 }
  0x72   :  { %v1022_v15 = vld [vmem:[#allocation2] sm:$0xff]   ;;  %v1029_v16 = vld [vmem:[#allocation7 + $0x30] sm:$0xff]   ;;  %v1031_v18 = vld [vmem:[#allocation8] sm:$0xff]  }
  0x73   :  { %v1030_v17 = vld [vmem:[#allocation7 + $0x38] sm:$0xff]   ;;  %v1032_v19 = vld [vmem:[#allocation8 + $0x8] sm:$0xff]   ;;  %v1033_v20 = vld [vmem:[#allocation8 + $0x10] sm:$0xff]   ;;  %p1218_p9 = por %p1217_p8, %p1216_p7 }
  0x74   :  { %943 = vmatpush3.bf16.msra.mxu0 %v1015_v2  ;;  %963 = vmatpush3.bf16.msra.mxu1 %v1024_v6  ;;  %v1034_v21 = vld [vmem:[#allocation8 + $0x18] sm:$0xff]   ;;  %v1035_v22 = vld [vmem:[#allocation8 + $0x20] sm:$0xff]   ;;  %v1036_v23 = vld [vmem:[#allocation8 + $0x28] sm:$0xff]  }
  0x75   :  { %944 = vmatprep.subr.bf16.mxu0 %v1253_v0  ;;  %964 = vmatprep.subr.bf16.mxu1 %v1253_v0  ;;  %v830_v24 = vld [vmem:[%s1483_s2] ss:$0 sm:$0xff]  ;;  %v1037_v34 = vld [vmem:[#allocation8 + $0x30] sm:$0xff]   ;;  %v1039_v36 = vld [vmem:[#allocation10] ss:$8 sps:$4 sm:$0xff]   ;;  %p1219_p10 = pnand %p1218_p9, %p1212_p6 }
  0x76   :  { %v1038_v35 = vld [vmem:[#allocation8 + $0x38] sm:$0xff]   ;;  %v1041_v37 = vld [vmem:[#allocation10 + $0x4] ss:$8 sps:$4 sm:$0xff]   ;;  %v1045_v41 = vld [vmem:[#allocation10 + $0x20] ss:$8 sps:$4 sm:$0xff]  }
  0x77   :  { %v1044_v38 = vld [vmem:[#allocation10 + $0x14] ss:$8 sps:$4 sm:$0xff]   ;;  %v1042_v39 = vld [vmem:[#allocation10 + $0x10] ss:$8 sps:$4 sm:$0xff]   ;;  %v1047_v40 = vld [vmem:[#allocation10 + $0x24] ss:$8 sps:$4 sm:$0xff]  }
  0x78   :  { %945 = vmatpush3.bf16.msra.mxu0 %v1016_v3  ;;  %965 = vmatpush3.bf16.msra.mxu1 %v1025_v8  ;;  %v1050_v42 = vld [vmem:[#allocation10 + $0x34] ss:$8 sps:$4 sm:$0xff]   ;;  %v1048_v43 = vld [vmem:[#allocation10 + $0x30] ss:$8 sps:$4 sm:$0xff]   ;;  %v1053_v44 = vld [vmem:[#allocation10 + $0x44] ss:$8 sps:$4 sm:$0xff]  }
  0x79   :  { %946 = vmatprep.subr.bf16.mxu0 %v1253_v0  ;;  %966 = vmatprep.subr.bf16.mxu1 %v1253_v0  ;;  %v1051_v45 = vld [vmem:[#allocation10 + $0x40] ss:$8 sps:$4 sm:$0xff]   ;;  %v1056_v46 = vld [vmem:[#allocation10 + $0x54] ss:$8 sps:$4 sm:$0xff]   ;;  %v1054_v47 = vld [vmem:[#allocation10 + $0x50] ss:$8 sps:$4 sm:$0xff]  }
  0x7a   :  { %v840_v48 = vld [vmem:[%s1485_s4] ss:$0 sm:$0xff]  ;;  %v1059_v58 = vld [vmem:[#allocation10 + $0x64] ss:$8 sps:$4 sm:$0xff]   ;;  %v1057_v59 = vld [vmem:[#allocation10 + $0x60] ss:$8 sps:$4 sm:$0xff]  }
  0x7b   :  { %v1062_v60 = vld [vmem:[#allocation10 + $0x74] ss:$8 sps:$4 sm:$0xff]   ;;  %v1060_v61 = vld [vmem:[#allocation10 + $0x70] ss:$8 sps:$4 sm:$0xff]   ;;  %v1063_v63 = vld [vmem:[#allocation11 + $0x40] sm:$0xff]  }
  0x7c   :  { %947 = vmatpush3.bf16.msra.mxu0 %v1017_v5  ;;  %967 = vmatpush3.bf16.msra.mxu1 %v1026_v10  ;;  %v1065_v1 = vld [vmem:[#allocation11 + $0x48] sm:$0xff]   ;;  %v1067_v3 = vld [vmem:[#allocation11 + $0x50] sm:$0xff]   ;;  %v1069_v5 = vld [vmem:[#allocation11 + $0x58] sm:$0xff]  }
  0x7d   :  { %948 = vmatprep.subr.bf16.mxu0 %v1253_v0  ;;  %968 = vmatprep.subr.bf16.mxu1 %v1253_v0  ;;  %v1066_v2 = vld [vmem:[#allocation11 + $0x8] sm:$0xff]   ;;  %v1068_v4 = vld [vmem:[#allocation11 + $0x10] sm:$0xff]   ;;  %v1070_v6 = vld [vmem:[#allocation11 + $0x18] sm:$0xff]  }
  0x7e   :  { %v1072_v8 = vld [vmem:[#allocation11 + $0x20] sm:$0xff]   ;;  %v849_v10 = vld [vmem:[%s1487_s6] ss:$0 sm:$0xff] }
  0x80   :  { %949 = vmatpush3.bf16.msra.mxu0 %v1018_v7  ;;  %969 = vmatpush3.bf16.msra.mxu1 %v1027_v12  ;;  %v1071_v7 = vld [vmem:[#allocation11 + $0x60] sm:$0xff]  }
  0x81   :  { %950 = vmatprep.subr.bf16.mxu0 %v1253_v0  ;;  %970 = vmatprep.subr.bf16.mxu1 %v1253_v0 }
  0x84   :  { %951 = vmatpush3.bf16.msra.mxu0 %v1019_v9  ;;  %971 = vmatpush3.bf16.msra.mxu1 %v1028_v14  ;;  %v1073_v9 = vld [vmem:[#allocation11 + $0x68] sm:$0xff]  }
  0x85   :  { %952 = vmatprep.subr.bf16.mxu0 %v1253_v0  ;;  %972 = vmatprep.subr.bf16.mxu1 %v1253_v0 }
  0x88   :  { %953 = vmatpush3.bf16.msra.mxu0 %v1020_v11  ;;  %973 = vmatpush3.bf16.msra.mxu1 %v1029_v16 }
  0x89   :  { %954 = vmatprep.subr.bf16.mxu0 %v1253_v0  ;;  %974 = vmatprep.subr.bf16.mxu1 %v1253_v0 }
  0x8c   :  { %955 = vmatpush3.bf16.msra.mxu0 %v1021_v13  ;;  %975 = vmatpush3.bf16.msra.mxu1 %v1030_v17 }
  0x8d   :  { %980 = vmatprep.subr.bf16.mxu0 %v1253_v0  ;;  %583 = vmatprep.subr.bf16.mxu1 %v1041_v37 }
  0x8f   :  { %957 = vmatmul.mubr.bf16.vlgmr.msra.gmra.mrb[0].mxu0 %v1022_v15 }
  0x90   :  { %996 = vmatprep.mubr.msk.bf16.mxu0 %vm1254_vm0, %v1253_v0  ;;  %981 = vmatpush3.bf16.msra.mxu0 %v1031_v18 }
  0x91   :  { %982 = vmatprep.subr.bf16.mxu0 %v1253_v0 }
  0x94   :  { %983 = vmatpush3.bf16.msra.mxu0 %v1032_v19 }
  0x95   :  { %984 = vmatprep.subr.bf16.mxu0 %v1253_v0 }
  0x98   :  { %985 = vmatpush3.bf16.msra.mxu0 %v1033_v20  ;;  %v1074_v20 = vld [vmem:[#allocation11 + $0x28] sm:$0xff]  }
  0x99   :  { %986 = vmatprep.subr.bf16.mxu0 %v1253_v0 }
  0x9c   :  { %987 = vmatpush3.bf16.msra.mxu0 %v1034_v21  ;;  %v1075_v21 = vld [vmem:[#allocation11 + $0x70] sm:$0xff]  }
  0x9d   :  { %988 = vmatprep.subr.bf16.mxu0 %v1253_v0 }
  0xa0   :  { %989 = vmatpush3.bf16.msra.mxu0 %v1035_v22  ;;  %v1076_v22 = vld [vmem:[#allocation11 + $0x30] sm:$0xff]  }
  0xa1   :  { %990 = vmatprep.subr.bf16.mxu0 %v1253_v0 }
  0xa4   :  { %991 = vmatpush3.bf16.msra.mxu0 %v1036_v23  ;;  %v1077_v23 = vld [vmem:[#allocation11 + $0x78] sm:$0xff]  }
  0xa5   :  { %992 = vmatprep.subr.bf16.mxu0 %v1253_v0 }
  0xa8   :  { %993 = vmatpush3.bf16.msra.mxu0 %v1037_v34 }
  0xa9   :  { %994 = vmatprep.subr.bf16.mxu0 %v1253_v0  ;;  %v1064_v0 = vld [vmem:[#allocation11] sm:$0xff]  }
  0xac   :  { %995 = vmatpush3.bf16.msra.mxu0 %v1038_v35 }
  0xad   :  { %918 = vmatprep.subr.bf16.mxu0 %v1063_v63 }
 0x162   :  { %v235_v25 = vpop.f32.mrb[0].mxu0 }
 0x163   :  { %v236_v26 = vadd.f32 %v830_v24, %v235_v25  ;;  %v958_v27 = vpop.f32.mrb[1].mxu0  ;;  %v493_v25 = vlaneseq }
 0x164   :  { %v238_v28 = vpop.f32.mrb[2].mxu0 }
 0x165   :  { %v239_v29 = vadd.f32 %v830_v24, %v238_v28  ;;  %v959_v30 = vpop.f32.mrb[3].mxu0  ;;  %v242_v31 = vmax.f32 %v236_v26, 0.0  ;;  %v1078_v24 = vld [vmem:[#allocation11 + $0x38] sm:$0xff]   ;;  %v494_v26 = vshrl.u32 %v493_v25, 7 }
 0x166   :  { %v491_v28 = vld [vmem:[%s1489_s8] sm:$0x3] }
 0x167   :  { %v243_v32 = vmax.f32 %v239_v29, 0.0  ;;  %v495_v27 = vsub.s32 0, %v494_v26  ;;  %v499_v29 = vsub.s32 1, %v494_v26 }
 0x169   :  { %v244_v33 = vpack.c.bf16 %v243_v32, %v242_v31  ;;  %v496_v30 = vrot.slane %v491_v28, %v495_v27  ;;  %v500_v31 = vrot.slane %v491_v28, %v499_v29 }
 0x16b   :  { %977 = vmatmul.mubr.bf16.vlgmr.msra.gmra.mrb[0].mxu1 %v244_v33 }
 0x16c   :  { %584 = vmatpush1.bf16.msra.mxu1 %v1039_v36  ;;  %615 = vmatprep.mubr.bf16.mxu1 %v1255_v62 }
 0x16d   :  { %585 = vmatprep.subr.bf16.mxu1 %v1044_v38 }
 0x170   :  { %586 = vmatpush1.bf16.msra.mxu1 %v1042_v39 }
 0x171   :  { %587 = vmatprep.subr.bf16.mxu1 %v1047_v40 }
 0x174   :  { %588 = vmatpush1.bf16.msra.mxu1 %v1045_v41 }
 0x175   :  { %589 = vmatprep.subr.bf16.mxu1 %v1050_v42 }
 0x178   :  { %590 = vmatpush1.bf16.msra.mxu1 %v1048_v43 }
 0x179   :  { %591 = vmatprep.subr.bf16.mxu1 %v1053_v44 }
 0x17c   :  { %592 = vmatpush1.bf16.msra.mxu1 %v1051_v45 }
 0x17d   :  { %593 = vmatprep.subr.bf16.mxu1 %v1056_v46 }
 0x180   :  { %594 = vmatpush1.bf16.msra.mxu1 %v1054_v47  ;;  %v874_v47 = vld [vmem:[%s1491_s10] ss:$0 sm:$0xff] }
 0x181   :  { %595 = vmatprep.subr.bf16.mxu1 %v1059_v58 }
 0x184   :  { %596 = vmatpush1.bf16.msra.mxu1 %v1057_v59 }
 0x185   :  { %597 = vmatprep.subr.bf16.mxu1 %v1062_v60 }
 0x188   :  { %598 = vmatpush1.bf16.msra.mxu1 %v1060_v61 }
 0x23e   :  { %v350_v49 = vpop.f32.mrb[0].mxu1 }
 0x23f   :  { %v351_v50 = vadd.f32 %v840_v48, %v350_v49  ;;  %v978_v51 = vpop.f32.mrb[1].mxu1 }
 0x240   :  { %v353_v52 = vpop.f32.mrb[2].mxu1 }
 0x241   :  { %v354_v53 = vadd.f32 %v840_v48, %v353_v52  ;;  %v979_v54 = vpop.f32.mrb[3].mxu1  ;;  %v357_v55 = vmax.f32 %v351_v50, 0.0 }
 0x243   :  { %v358_v56 = vmax.f32 %v354_v53, 0.0 }
 0x245   :  { %v359_v57 = vpack.c.bf16 %v358_v56, %v357_v55 }
 0x247   :  { %997 = vmatmul.mubr.bf16.vlgmr.msra.gmra.mrb[4].mxu0 %v359_v57 }
 0x248   :  { %919 = vmatpush3.bf16.msra.mxu0 %v1064_v0 }
 0x249   :  { %920 = vmatprep.subr.bf16.mxu0 %v1065_v1 }
 0x24c   :  { %921 = vmatpush3.bf16.msra.mxu0 %v1066_v2 }
 0x24d   :  { %922 = vmatprep.subr.bf16.mxu0 %v1067_v3 }
 0x250   :  { %923 = vmatpush3.bf16.msra.mxu0 %v1068_v4 }
 0x251   :  { %924 = vmatprep.subr.bf16.mxu0 %v1069_v5 }
 0x254   :  { %925 = vmatpush3.bf16.msra.mxu0 %v1070_v6 }
 0x255   :  { %926 = vmatprep.subr.bf16.mxu0 %v1071_v7 }
 0x258   :  { %927 = vmatpush3.bf16.msra.mxu0 %v1072_v8 }
 0x259   :  { %928 = vmatprep.subr.bf16.mxu0 %v1073_v9 }
 0x25c   :  { %929 = vmatpush3.bf16.msra.mxu0 %v1074_v20 }
 0x25d   :  { %930 = vmatprep.subr.bf16.mxu0 %v1075_v21 }
 0x260   :  { %931 = vmatpush3.bf16.msra.mxu0 %v1076_v22 }
 0x261   :  { %932 = vmatprep.subr.bf16.mxu0 %v1077_v23 }
 0x264   :  { %933 = vmatpush3.bf16.msra.mxu0 %v1078_v24 }
 0x31a   :  { %v465_v11 = vpop.f32.mrb[4].mxu0 }
 0x31b   :  { %v466_v12 = vadd.f32 %v849_v10, %v465_v11  ;;  %v998_v13 = vpop.f32.mrb[5].mxu0 }
 0x31c   :  { %v468_v14 = vpop.f32.mrb[6].mxu0 }
 0x31d   :  { %v469_v15 = vadd.f32 %v849_v10, %v468_v14  ;;  %v999_v16 = vpop.f32.mrb[7].mxu0  ;;  %v472_v17 = vmax.f32 %v466_v12, 0.0 }
 0x31f   :  { %v473_v18 = vmax.f32 %v469_v15, 0.0 }
 0x321   :  { %v474_v19 = vpack.c.bf16 %v473_v18, %v472_v17 }
 0x323   :  { %616 = vmatmul.mubr.bf16.vlgmr.msra.gmra.mrb[4].mxu1 %v474_v19 }
 0x3f6   :  { %v617_v32 = vpop.f32.mrb[4].mxu1 }
 0x3f7   :  { %v618_v33 = vadd.f32 %v617_v32, %v496_v30  ;;  %v619_v34 = vpop.f32.mrb[5].mxu1 }
 0x3f8   :  { %v620_v35 = vadd.f32 %v619_v34, %v500_v31  ;;  %v621_v36 = vpop.f32.mrb[6].mxu1 }
 0x3f9   :  { %v622_v37 = vadd.f32 %v621_v36, %v496_v30  ;;  %v623_v38 = vpop.f32.mrb[7].mxu1  ;;  %v626_v40 = vmax.f32 %v618_v33, 0.0 }
 0x3fa   :  { %v624_v39 = vadd.f32 %v623_v38, %v500_v31  ;;  %v627_v42 = vmax.f32 %v620_v35, 0.0 }
 0x3fb   :  { %v628_v41 = vmax.f32 %v622_v37, 0.0 }
 0x3fc   :  { %v629_v43 = vmax.f32 %v624_v39, 0.0 }
 0x3fd   :  { %v630_v44 = vpack.c.bf16 %v628_v41, %v626_v40 }
 0x3fe   :  { %v631_v45 = vpack.c.bf16 %v629_v43, %v627_v42 }
 0x400   :  { %799 = vmatprep.mubr.bf16.mxu0 %v631_v45 }
 0x401   :  { %800 = vmatmul.mubr.bf16.vlgmr.msra.gmra.mrb[8].mxu0 %v630_v44 }
 0x4d4   :  { %v934_v46 = vpop.f32.mrb[8].mxu0 }
 0x4d5   :  { %v935_v48 = vpop.f32.mrb[9].mxu0 }
 0x4d6   :  { %v936_v49 = vadd.f32 %v935_v48, %v934_v46  ;;  %v937_v50 = vpop.f32.mrb[10].mxu0 }
 0x4d7   :  { %v938_v51 = vpop.f32.mrb[11].mxu0 }
 0x4d8   :  { %v802_v52 = vadd.f32 %v936_v49, %v874_v47  ;;  %v939_v53 = vadd.f32 %v938_v51, %v937_v50 }
 0x4da   :  { %808 = vst [vmem:[#allocation13] sm:$0xff] %v802_v52  ;;  %v805_v54 = vadd.f32 %v939_v53, %v874_v47 }
 0x4dc   :  { %809 = vst [vmem:[#allocation13 + $0x8] sm:$0xff] %v805_v54 }
 0x4dd   :  { %1222 = shalt.err (!%p1219_p10)
}
 0x4de   :  { %s1223_s23 = scalar_lea.hbm %s1492_s11, 256 }
 0x4df   :  { %p1224_p11 = scmp.ne.s32.totalorder %s1492_s11, %s1223_s23  ;;  %p1227_p12 = scmp.lt.u32.totalorder %s1223_s23, %s1492_s11 }
 0x4e1   :  { %p1229_p13 = pnand %p1227_p12, %p1224_p11 }
 0x4e3   :  { %1232 = shalt.err (!%p1229_p13)
}
 0x4e4   :  { %821 = dma.vmem_to_hbm [thread:$0]  %s816_s19, 256, %s1492_s11, [#allocation4], %s1250_s3, %s1250_s3, %s1251_s27  }
 0x4e5   :  { %1241 = dma.done.wait [#allocation4], 256  }
 0x4e6   :  { %1242 = vsyncadd [#allocation4], 4294967040 }
 0x4e7   :  { %825 = vsyncpa [#allocation3], 1 }
 0x4e8   :  { %826 = vsyncpa [#allocation6], 1 }
 0x4e9   :  { %827 = vsyncpa [#allocation9], 1 }
 0x4ea   :  { %828 = vsyncpa [#allocation12], 1 }
 0x4eb   :  { %829 = vsyncpa [#allocation4], 1 }

</bundles_post_ra>
